<compile_context>
chip_gen: v6e
topology: v6e:2x2x1
jax: 0.10.0
libtpu: 0.0.40
codegen_flags: <defaults>
</compile_context>

<pallas_src>
import functools

import numpy as np
import jax
import jax.numpy as jnp
from jax import lax
from jax.experimental import pallas as pl
from jax.experimental.pallas import tpu as pltpu


PAD = 128  # lane-aligned halo width of the padded-activation scratch


def residual_block_kernel(x_ref, w3_ref, b3_ref, w1_ref, b1_ref, mask_ref,
                          o_ref, apad_ref, h_ref, *, W, num_layers,
                          matmul_dtype):
    """All residual layers for one block of `block_batch` images.

    x_ref    : (1, C, N)        input images, N = block_batch*H*W (f32)
    w3_ref   : (L, 9, Cres, C)  3x3 conv weights, tap = ky*3+kx   (matmul_dtype)
    b3_ref   : (L, Cres, 1)     3x3 conv bias (f32)
    w1_ref   : (L, C, Cres)     1x1 conv weights (matmul_dtype)
    b1_ref   : (L, C, 1)        1x1 conv bias (f32)
    mask_ref : (9, N)           per-tap validity masks (matmul_dtype)
    o_ref    : (1, C, N)        output images
    apad_ref : (C, 2*PAD + N)   VMEM scratch: relu(h) with zero halo (matmul_dtype)
    h_ref    : (C, N)           VMEM scratch: residual stream (f32)
    """
    C = x_ref.shape[1]
    N = x_ref.shape[2]

    # Zero the halo strips.  Done every step (not only on program_id==0):
    # scratch is per-TensorCore and the parallel grid axis may be split
    # across cores, so every step must guarantee a finite halo before reads.
    apad_ref[:, 0:PAD] = jnp.zeros((C, PAD), matmul_dtype)
    apad_ref[:, PAD + N:2 * PAD + N] = jnp.zeros((C, PAD), matmul_dtype)

    # Residual stream staged explicitly in VMEM (f32).
    h_ref[...] = x_ref[0].astype(jnp.float32)

    for l in range(num_layers):                    # static unroll over layers
        h = h_ref[...]
        a = jnp.maximum(h, 0.0).astype(matmul_dtype)   # ReLU #1, MXU dtype
        apad_ref[:, PAD:PAD + N] = a               # single aligned store

        # 3x3 conv = 9 accumulated (Cres,C)x(C,N) matmuls over taps.  Each tap
        # operand is a lane-shifted view of the haloed scratch times a
        # host-precomputed validity mask (kills the zero-padding positions and
        # row-to-row / image-to-image bleed of the flattened lane layout).
        z = b3_ref[l]                              # (Cres, 1) -> broadcasts
        for dy in (-1, 0, 1):
            for dx in (-1, 0, 1):
                tap = (dy + 1) * 3 + (dx + 1)      # == ky*3 + kx
                s = dy * W + dx
                t = apad_ref[:, PAD + s:PAD + s + N]       # (C, N)
                if not (dy == 0 and dx == 0):
                    t = t * mask_ref[tap:tap + 1, :]       # (1,N) broadcast
                z = z + jnp.dot(w3_ref[l, tap], t,
                                preferred_element_type=jnp.float32)
        a2 = jnp.maximum(z, 0.0).astype(matmul_dtype)      # ReLU #2, (Cres,N)

        # 1x1 conv == (C, Cres) x (Cres, N) matmul.
        y = jnp.dot(w1_ref[l], a2,
                    preferred_element_type=jnp.float32) + b1_ref[l]

        h_ref[...] = h + y                         # residual add (f32)

    o_ref[0] = h_ref[...].astype(o_ref.dtype)      # single lane-dense store


def _pick_block_batch(batch, ch, hw, bytes_per_elem=4,
                      budget_bytes=4 * 2 ** 20):
    """Largest batch block that (a) divides the batch, (b) keeps >= 2 grid
    steps when batch >= 2 (so both v7x TensorCores get work), and (c) keeps
    the per-step activation footprint modest."""
    best = 1
    for cand in range(1, batch + 1):
        if batch % cand:
            continue
        if batch >= 2 and batch // cand < 2:
            continue
        if cand * hw * ch * bytes_per_elem * 6 > budget_bytes:
            continue
        best = cand
    return best


def residual_block_forward(x_nchw, params, matmul_dtype=jnp.bfloat16,
                           block_batch=None):
    """ResidualBlock.forward (activation='relu').  Input/output are NCHW.

    matmul_dtype: dtype of the MXU operands (weights + activations).  bf16 is
    the fast default; accumulation is always f32.  Pass jnp.float32 for a
    numerically tight path.
    """
    B, C, H, W = x_nchw.shape
    L = len(params)
    Cres = params[0][0].shape[0]
    HW = H * W
    assert W + 1 <= PAD, "halo too narrow for this spatial width"

    if block_batch is None:
        block_batch = _pick_block_batch(B, C, HW, x_nchw.dtype.itemsize)
    assert B % block_batch == 0
    nb = B // block_batch
    N = block_batch * HW

    # ---- Host-side packing (once); everything below stays VMEM-resident
    # across the whole batch grid via constant index_maps. ----
    # OIHW (Cres, C, 3, 3) -> (ky, kx, Cres, C) -> (9, Cres, C), tap = ky*3+kx
    w3_mats = jnp.stack(
        [jnp.transpose(w3, (2, 3, 0, 1)).reshape(9, Cres, C)
         for (w3, _, _, _) in params]).astype(matmul_dtype)   # (L, 9, Cres, C)
    b3_vecs = jnp.stack([b3.reshape(Cres, 1)
                         for (_, b3, _, _) in params]).astype(jnp.float32)
    w1_mats = jnp.stack([w1[:, :, 0, 0]
                         for (_, _, w1, _) in params]).astype(matmul_dtype)
    b1_vecs = jnp.stack([b1.reshape(C, 1)
                         for (_, _, _, b1) in params]).astype(jnp.float32)

    # Per-tap validity masks over the flattened (block_batch*H*W) lane axis.
    idx = np.arange(N)
    row = (idx // W) % H
    col = idx % W
    masks_np = np.empty((9, N), np.float32)
    for dy in (-1, 0, 1):
        for dx in (-1, 0, 1):
            tap = (dy + 1) * 3 + (dx + 1)
            valid = ((row + dy >= 0) & (row + dy < H) &
                     (col + dx >= 0) & (col + dx < W))
            masks_np[tap] = valid.astype(np.float32)
    masks = jnp.asarray(masks_np).astype(matmul_dtype)

    # Batch-block the images onto the lane axis: (B,C,H,W) -> (nb, C, N).
    x_blk = (x_nchw.reshape(nb, block_batch, C, HW)
             .transpose(0, 2, 1, 3)
             .reshape(nb, C, N))

    kernel = functools.partial(residual_block_kernel, W=W, num_layers=L,
                               matmul_dtype=matmul_dtype)

    # VMEM budgeting: set an explicit limit only when the estimate exceeds the
    # most conservative default (16 MiB scoped on v5e); keep headroom below
    # v7x's 64 MiB physical VMEM.
    mm_bytes = np.dtype(matmul_dtype).itemsize
    io_bytes = np.dtype(x_nchw.dtype).itemsize
    vmem_est = (2 * 2 * C * N * io_bytes                 # x/out, double-buffered
                + C * (2 * PAD + N) * mm_bytes           # haloed activation
                + C * N * 4                              # residual stream
                + 9 * N * mm_bytes                       # tap masks
                + (w3_mats.size + w1_mats.size) * mm_bytes
                + (b3_vecs.size + b1_vecs.size) * 4)
    cparams = dict(dimension_semantics=("parallel",))
    if vmem_est > 12 * 2 ** 20:
        cparams["vmem_limit_bytes"] = int(min(1.5 * vmem_est, 56 * 2 ** 20))

    out = pl.pallas_call(
        kernel,
        out_shape=jax.ShapeDtypeStruct((nb, C, N), x_nchw.dtype),
        grid_spec=pltpu.PrefetchScalarGridSpec(
            num_scalar_prefetch=0,
            grid=(nb,),
            in_specs=[
                pl.BlockSpec((1, C, N), lambda b: (b, 0, 0)),
                pl.BlockSpec((L, 9, Cres, C), lambda b: (0, 0, 0, 0)),
                pl.BlockSpec((L, Cres, 1), lambda b: (0, 0, 0)),
                pl.BlockSpec((L, C, Cres), lambda b: (0, 0, 0)),
                pl.BlockSpec((L, C, 1), lambda b: (0, 0, 0)),
                pl.BlockSpec((9, N), lambda b: (0, 0)),
            ],
            out_specs=pl.BlockSpec((1, C, N), lambda b: (b, 0, 0)),
            scratch_shapes=[
                pltpu.VMEM((C, 2 * PAD + N), matmul_dtype),  # haloed relu(h)
                pltpu.VMEM((C, N), jnp.float32),             # residual stream
            ],
        ),
        compiler_params=pltpu.CompilerParams(**cparams),
    )(x_blk, w3_mats, b3_vecs, w1_mats, b1_vecs, masks)

    return (out.reshape(nb, C, block_batch, HW)
            .transpose(0, 2, 1, 3)
            .reshape(B, C, H, W))


def init_params(key, ch_hidden, ch_residual, num_residual_layers):
    """Deterministic init mirroring the custom Conv2d init:
    weight ~ N(0, 1/sqrt(fan_in)), bias = 0.  Weights kept in PyTorch OIHW."""
    params = []
    for _ in range(num_residual_layers):
        key, k3, k1 = jax.random.split(key, 3)
        fan3 = ch_hidden * 3 * 3
        w3 = jax.random.normal(k3, (ch_residual, ch_hidden, 3, 3),
                               jnp.float32) / np.sqrt(fan3)
        b3 = jnp.zeros((ch_residual,), jnp.float32)
        fan1 = ch_residual * 1 * 1
        w1 = jax.random.normal(k1, (ch_hidden, ch_residual, 1, 1),
                               jnp.float32) / np.sqrt(fan1)
        b1 = jnp.zeros((ch_hidden,), jnp.float32)
        params.append((w3, b3, w1, b1))
    return params


def reference_forward(x_nchw, params):
    """Pure-JAX reference matching the PyTorch module exactly (NCHW, f32)."""
    dn = ("NCHW", "OIHW", "NCHW")
    h = x_nchw
    for (w3, b3, w1, b1) in params:
        a = jax.nn.relu(h)
        z = lax.conv_general_dilated(a, w3, (1, 1), "SAME",
                                     dimension_numbers=dn) + b3.reshape(1, -1, 1, 1)
        a2 = jax.nn.relu(z)
        y = lax.conv_general_dilated(a2, w1, (1, 1), "SAME",
                                     dimension_numbers=dn) + b1.reshape(1, -1, 1, 1)
        h = h + y
    return h


if __name__ == "__main__":
    # Small config consistent with the module (activation='relu').
    batch, ch_hidden, ch_residual = 4, 8, 4
    H = W = 16
    num_residual_layers = 2

    key = jax.random.PRNGKey(0)
    key, kx = jax.random.split(key)
    x = jax.random.normal(kx, (batch, ch_hidden, H, W), jnp.float32)  # NCHW

    params = init_params(key, ch_hidden, ch_residual, num_residual_layers)

    ref = jax.block_until_ready(reference_forward(x, params))

    # Exact path (f32 MXU operands) -> tight check against the lax.conv ref.
    out_f32 = jax.block_until_ready(
        residual_block_forward(x, params, matmul_dtype=jnp.float32))
    assert out_f32.shape == x.shape and out_f32.dtype == x.dtype
    np.testing.assert_allclose(np.asarray(out_f32), np.asarray(ref),
                               rtol=1e-4, atol=1e-4)

    # Default fast path (bf16 MXU operands, f32 accumulation) -> loose check.
    out_bf16 = jax.block_until_ready(residual_block_forward(x, params))
    assert out_bf16.shape == x.shape and out_bf16.dtype == x.dtype
    np.testing.assert_allclose(np.asarray(out_bf16), np.asarray(ref),
                               rtol=5e-2, atol=5e-2)

    print("KERNEL_OK")
</pallas_src>

<mosaic_0001>
module attributes {stable_mosaic.version = 11 : i64} {
  func.func @residual_block_kernel(%arg0: i32, %arg1: memref<1x8x512xf32, #tpu.memory_space<vmem>>, %arg2: memref<2x9x4x8xf32, #tpu.memory_space<vmem>>, %arg3: memref<2x4x1xf32, #tpu.memory_space<vmem>>, %arg4: memref<2x8x4xf32, #tpu.memory_space<vmem>>, %arg5: memref<2x8x1xf32, #tpu.memory_space<vmem>>, %arg6: memref<9x512xf32, #tpu.memory_space<vmem>>, %arg7: memref<1x8x512xf32, #tpu.memory_space<vmem>>, %arg8: memref<8x768xf32, #tpu.memory_space<vmem>>, %arg9: memref<8x512xf32, #tpu.memory_space<vmem>>) attributes {dimension_semantics = [#tpu.dimension_semantics<parallel>], iteration_bounds = array<i64: 2>, scalar_prefetch = 0 : i64, scratch_operands = 2 : i64, tpu.core_type = #tpu.core_type<tc>, window_params = [{transform_indices = @transform_0, window_bounds = array<i64: 1, 8, 512>}, {pipeline_mode = #tpu.pipeline_mode<synchronous>, transform_indices = @transform_1, window_bounds = array<i64: 2, 9, 4, 8>}, {pipeline_mode = #tpu.pipeline_mode<synchronous>, transform_indices = @transform_2, window_bounds = array<i64: 2, 4, 1>}, {pipeline_mode = #tpu.pipeline_mode<synchronous>, transform_indices = @transform_3, window_bounds = array<i64: 2, 8, 4>}, {pipeline_mode = #tpu.pipeline_mode<synchronous>, transform_indices = @transform_4, window_bounds = array<i64: 2, 8, 1>}, {pipeline_mode = #tpu.pipeline_mode<synchronous>, transform_indices = @transform_5, window_bounds = array<i64: 9, 512>}, {transform_indices = @transform_6, window_bounds = array<i64: 1, 8, 512>}]} {
    %cst = arith.constant 0.000000e+00 : f32
    %0 = vector.broadcast %cst : f32 to vector<8x128xf32>
    %c0 = arith.constant 0 : index
    %c0_0 = arith.constant 0 : index
    %1 = vector.load %arg8[%c0, %c0_0] : memref<8x768xf32, #tpu.memory_space<vmem>>, vector<8x128xf32>
    tpu.vector_store %arg8[%c0, %c0_0], %0 {strides = array<i32>} : memref<8x768xf32, #tpu.memory_space<vmem>>, vector<8x128xf32>,
    %cst_1 = arith.constant 0.000000e+00 : f32
    %2 = vector.broadcast %cst_1 : f32 to vector<8x128xf32>
    %c0_2 = arith.constant 0 : index
    %c640 = arith.constant 640 : index
    %3 = vector.load %arg8[%c0_2, %c640] : memref<8x768xf32, #tpu.memory_space<vmem>>, vector<8x128xf32>
    tpu.vector_store %arg8[%c0_2, %c640], %2 {strides = array<i32>} : memref<8x768xf32, #tpu.memory_space<vmem>>, vector<8x128xf32>,
    %c0_3 = arith.constant 0 : index
    %c0_4 = arith.constant 0 : index
    %c0_5 = arith.constant 0 : index
    %4 = vector.load %arg1[%c0_3, %c0_4, %c0_5] : memref<1x8x512xf32, #tpu.memory_space<vmem>>, vector<1x8x512xf32>
    %5 = vector.shape_cast %4 : vector<1x8x512xf32> to vector<8x512xf32>
    %c0_6 = arith.constant 0 : index
    %c0_7 = arith.constant 0 : index
    %6 = vector.load %arg9[%c0_6, %c0_7] : memref<8x512xf32, #tpu.memory_space<vmem>>, vector<8x512xf32>
    tpu.vector_store %arg9[%c0_6, %c0_7], %5 {strides = array<i32>} : memref<8x512xf32, #tpu.memory_space<vmem>>, vector<8x512xf32>,
    %c0_8 = arith.constant 0 : index
    %c0_9 = arith.constant 0 : index
    %7 = vector.load %arg9[%c0_8, %c0_9] : memref<8x512xf32, #tpu.memory_space<vmem>>, vector<8x512xf32>
    %cst_10 = arith.constant 0.000000e+00 : f32
    %8 = vector.broadcast %cst_10 : f32 to vector<8x512xf32>
    %9 = arith.maximumf %7, %8 : vector<8x512xf32>
    %c0_11 = arith.constant 0 : index
    %c128 = arith.constant 128 : index
    %10 = vector.load %arg8[%c0_11, %c128] : memref<8x768xf32, #tpu.memory_space<vmem>>, vector<8x512xf32>
    tpu.vector_store %arg8[%c0_11, %c128], %9 {strides = array<i32>} : memref<8x768xf32, #tpu.memory_space<vmem>>, vector<8x512xf32>,
    %c0_12 = arith.constant 0 : index
    %c0_13 = arith.constant 0 : index
    %c0_14 = arith.constant 0 : index
    %11 = vector.load %arg3[%c0_12, %c0_13, %c0_14] : memref<2x4x1xf32, #tpu.memory_space<vmem>>, vector<1x4x1xf32>
    %12 = vector.shape_cast %11 : vector<1x4x1xf32> to vector<4x1xf32>
    %c0_15 = arith.constant 0 : index
    %c111 = arith.constant 111 : index
    %13 = vector.load %arg8[%c0_15, %c111] : memref<8x768xf32, #tpu.memory_space<vmem>>, vector<8x512xf32>
    %c0_16 = arith.constant 0 : index
    %c0_17 = arith.constant 0 : index
    %14 = vector.load %arg6[%c0_16, %c0_17] : memref<9x512xf32, #tpu.memory_space<vmem>>, vector<1x512xf32>
    %15 = vector.broadcast %14 : vector<1x512xf32> to vector<8x512xf32>
    %16 = arith.mulf %13, %15 : vector<8x512xf32>
    %c0_18 = arith.constant 0 : index
    %c0_19 = arith.constant 0 : index
    %c0_20 = arith.constant 0 : index
    %c0_21 = arith.constant 0 : index
    %17 = vector.load %arg2[%c0_18, %c0_19, %c0_20, %c0_21] : memref<2x9x4x8xf32, #tpu.memory_space<vmem>>, vector<1x1x4x8xf32>
    %18 = vector.shape_cast %17 : vector<1x1x4x8xf32> to vector<4x8xf32>
    %cst_22 = arith.constant dense<0.000000e+00> : vector<4x512xf32>
    %19 = tpu.matmul %18, %16, %cst_22 {dimension_numbers = #tpu.dot_dimension_numbers<[1], [0], [0], [1], [0, 0, 1, 1], [], []>} : vector<4x8xf32>, vector<8x512xf32>, vector<4x512xf32> -> vector<4x512xf32>
    %20 = vector.broadcast %12 : vector<4x1xf32> to vector<4x512xf32>
    %21 = arith.addf %20, %19 : vector<4x512xf32>
    %c0_23 = arith.constant 0 : index
    %c112 = arith.constant 112 : index
    %22 = vector.load %arg8[%c0_23, %c112] : memref<8x768xf32, #tpu.memory_space<vmem>>, vector<8x512xf32>
    %c1 = arith.constant 1 : index
    %c0_24 = arith.constant 0 : index
    %23 = vector.load %arg6[%c1, %c0_24] : memref<9x512xf32, #tpu.memory_space<vmem>>, vector<1x512xf32>
    %24 = vector.broadcast %23 : vector<1x512xf32> to vector<8x512xf32>
    %25 = arith.mulf %22, %24 : vector<8x512xf32>
    %c0_25 = arith.constant 0 : index
    %c1_26 = arith.constant 1 : index
    %c0_27 = arith.constant 0 : index
    %c0_28 = arith.constant 0 : index
    %26 = vector.load %arg2[%c0_25, %c1_26, %c0_27, %c0_28] : memref<2x9x4x8xf32, #tpu.memory_space<vmem>>, vector<1x1x4x8xf32>
    %27 = vector.shape_cast %26 : vector<1x1x4x8xf32> to vector<4x8xf32>
    %cst_29 = arith.constant dense<0.000000e+00> : vector<4x512xf32>
    %28 = tpu.matmul %27, %25, %cst_29 {dimension_numbers = #tpu.dot_dimension_numbers<[1], [0], [0], [1], [0, 0, 1, 1], [], []>} : vector<4x8xf32>, vector<8x512xf32>, vector<4x512xf32> -> vector<4x512xf32>
    %29 = arith.addf %21, %28 : vector<4x512xf32>
    %c0_30 = arith.constant 0 : index
    %c113 = arith.constant 113 : index
    %30 = vector.load %arg8[%c0_30, %c113] : memref<8x768xf32, #tpu.memory_space<vmem>>, vector<8x512xf32>
    %c2 = arith.constant 2 : index
    %c0_31 = arith.constant 0 : index
    %31 = vector.load %arg6[%c2, %c0_31] : memref<9x512xf32, #tpu.memory_space<vmem>>, vector<1x512xf32>
    %32 = vector.broadcast %31 : vector<1x512xf32> to vector<8x512xf32>
    %33 = arith.mulf %30, %32 : vector<8x512xf32>
    %c0_32 = arith.constant 0 : index
    %c2_33 = arith.constant 2 : index
    %c0_34 = arith.constant 0 : index
    %c0_35 = arith.constant 0 : index
    %34 = vector.load %arg2[%c0_32, %c2_33, %c0_34, %c0_35] : memref<2x9x4x8xf32, #tpu.memory_space<vmem>>, vector<1x1x4x8xf32>
    %35 = vector.shape_cast %34 : vector<1x1x4x8xf32> to vector<4x8xf32>
    %cst_36 = arith.constant dense<0.000000e+00> : vector<4x512xf32>
    %36 = tpu.matmul %35, %33, %cst_36 {dimension_numbers = #tpu.dot_dimension_numbers<[1], [0], [0], [1], [0, 0, 1, 1], [], []>} : vector<4x8xf32>, vector<8x512xf32>, vector<4x512xf32> -> vector<4x512xf32>
    %37 = arith.addf %29, %36 : vector<4x512xf32>
    %c0_37 = arith.constant 0 : index
    %c127 = arith.constant 127 : index
    %38 = vector.load %arg8[%c0_37, %c127] : memref<8x768xf32, #tpu.memory_space<vmem>>, vector<8x512xf32>
    %c3 = arith.constant 3 : index
    %c0_38 = arith.constant 0 : index
    %39 = vector.load %arg6[%c3, %c0_38] : memref<9x512xf32, #tpu.memory_space<vmem>>, vector<1x512xf32>
    %40 = vector.broadcast %39 : vector<1x512xf32> to vector<8x512xf32>
    %41 = arith.mulf %38, %40 : vector<8x512xf32>
    %c0_39 = arith.constant 0 : index
    %c3_40 = arith.constant 3 : index
    %c0_41 = arith.constant 0 : index
    %c0_42 = arith.constant 0 : index
    %42 = vector.load %arg2[%c0_39, %c3_40, %c0_41, %c0_42] : memref<2x9x4x8xf32, #tpu.memory_space<vmem>>, vector<1x1x4x8xf32>
    %43 = vector.shape_cast %42 : vector<1x1x4x8xf32> to vector<4x8xf32>
    %cst_43 = arith.constant dense<0.000000e+00> : vector<4x512xf32>
    %44 = tpu.matmul %43, %41, %cst_43 {dimension_numbers = #tpu.dot_dimension_numbers<[1], [0], [0], [1], [0, 0, 1, 1], [], []>} : vector<4x8xf32>, vector<8x512xf32>, vector<4x512xf32> -> vector<4x512xf32>
    %45 = arith.addf %37, %44 : vector<4x512xf32>
    %c0_44 = arith.constant 0 : index
    %c128_45 = arith.constant 128 : index
    %46 = vector.load %arg8[%c0_44, %c128_45] : memref<8x768xf32, #tpu.memory_space<vmem>>, vector<8x512xf32>
    %c0_46 = arith.constant 0 : index
    %c4 = arith.constant 4 : index
    %c0_47 = arith.constant 0 : index
    %c0_48 = arith.constant 0 : index
    %47 = vector.load %arg2[%c0_46, %c4, %c0_47, %c0_48] : memref<2x9x4x8xf32, #tpu.memory_space<vmem>>, vector<1x1x4x8xf32>
    %48 = vector.shape_cast %47 : vector<1x1x4x8xf32> to vector<4x8xf32>
    %cst_49 = arith.constant dense<0.000000e+00> : vector<4x512xf32>
    %49 = tpu.matmul %48, %46, %cst_49 {dimension_numbers = #tpu.dot_dimension_numbers<[1], [0], [0], [1], [0, 0, 1, 1], [], []>} : vector<4x8xf32>, vector<8x512xf32>, vector<4x512xf32> -> vector<4x512xf32>
    %50 = arith.addf %45, %49 : vector<4x512xf32>
    %c0_50 = arith.constant 0 : index
    %c129 = arith.constant 129 : index
    %51 = vector.load %arg8[%c0_50, %c129] : memref<8x768xf32, #tpu.memory_space<vmem>>, vector<8x512xf32>
    %c5 = arith.constant 5 : index
    %c0_51 = arith.constant 0 : index
    %52 = vector.load %arg6[%c5, %c0_51] : memref<9x512xf32, #tpu.memory_space<vmem>>, vector<1x512xf32>
    %53 = vector.broadcast %52 : vector<1x512xf32> to vector<8x512xf32>
    %54 = arith.mulf %51, %53 : vector<8x512xf32>
    %c0_52 = arith.constant 0 : index
    %c5_53 = arith.constant 5 : index
    %c0_54 = arith.constant 0 : index
    %c0_55 = arith.constant 0 : index
    %55 = vector.load %arg2[%c0_52, %c5_53, %c0_54, %c0_55] : memref<2x9x4x8xf32, #tpu.memory_space<vmem>>, vector<1x1x4x8xf32>
    %56 = vector.shape_cast %55 : vector<1x1x4x8xf32> to vector<4x8xf32>
    %cst_56 = arith.constant dense<0.000000e+00> : vector<4x512xf32>
    %57 = tpu.matmul %56, %54, %cst_56 {dimension_numbers = #tpu.dot_dimension_numbers<[1], [0], [0], [1], [0, 0, 1, 1], [], []>} : vector<4x8xf32>, vector<8x512xf32>, vector<4x512xf32> -> vector<4x512xf32>
    %58 = arith.addf %50, %57 : vector<4x512xf32>
    %c0_57 = arith.constant 0 : index
    %c143 = arith.constant 143 : index
    %59 = vector.load %arg8[%c0_57, %c143] : memref<8x768xf32, #tpu.memory_space<vmem>>, vector<8x512xf32>
    %c6 = arith.constant 6 : index
    %c0_58 = arith.constant 0 : index
    %60 = vector.load %arg6[%c6, %c0_58] : memref<9x512xf32, #tpu.memory_space<vmem>>, vector<1x512xf32>
    %61 = vector.broadcast %60 : vector<1x512xf32> to vector<8x512xf32>
    %62 = arith.mulf %59, %61 : vector<8x512xf32>
    %c0_59 = arith.constant 0 : index
    %c6_60 = arith.constant 6 : index
    %c0_61 = arith.constant 0 : index
    %c0_62 = arith.constant 0 : index
    %63 = vector.load %arg2[%c0_59, %c6_60, %c0_61, %c0_62] : memref<2x9x4x8xf32, #tpu.memory_space<vmem>>, vector<1x1x4x8xf32>
    %64 = vector.shape_cast %63 : vector<1x1x4x8xf32> to vector<4x8xf32>
    %cst_63 = arith.constant dense<0.000000e+00> : vector<4x512xf32>
    %65 = tpu.matmul %64, %62, %cst_63 {dimension_numbers = #tpu.dot_dimension_numbers<[1], [0], [0], [1], [0, 0, 1, 1], [], []>} : vector<4x8xf32>, vector<8x512xf32>, vector<4x512xf32> -> vector<4x512xf32>
    %66 = arith.addf %58, %65 : vector<4x512xf32>
    %c0_64 = arith.constant 0 : index
    %c144 = arith.constant 144 : index
    %67 = vector.load %arg8[%c0_64, %c144] : memref<8x768xf32, #tpu.memory_space<vmem>>, vector<8x512xf32>
    %c7 = arith.constant 7 : index
    %c0_65 = arith.constant 0 : index
    %68 = vector.load %arg6[%c7, %c0_65] : memref<9x512xf32, #tpu.memory_space<vmem>>, vector<1x512xf32>
    %69 = vector.broadcast %68 : vector<1x512xf32> to vector<8x512xf32>
    %70 = arith.mulf %67, %69 : vector<8x512xf32>
    %c0_66 = arith.constant 0 : index
    %c7_67 = arith.constant 7 : index
    %c0_68 = arith.constant 0 : index
    %c0_69 = arith.constant 0 : index
    %71 = vector.load %arg2[%c0_66, %c7_67, %c0_68, %c0_69] : memref<2x9x4x8xf32, #tpu.memory_space<vmem>>, vector<1x1x4x8xf32>
    %72 = vector.shape_cast %71 : vector<1x1x4x8xf32> to vector<4x8xf32>
    %cst_70 = arith.constant dense<0.000000e+00> : vector<4x512xf32>
    %73 = tpu.matmul %72, %70, %cst_70 {dimension_numbers = #tpu.dot_dimension_numbers<[1], [0], [0], [1], [0, 0, 1, 1], [], []>} : vector<4x8xf32>, vector<8x512xf32>, vector<4x512xf32> -> vector<4x512xf32>
    %74 = arith.addf %66, %73 : vector<4x512xf32>
    %c0_71 = arith.constant 0 : index
    %c145 = arith.constant 145 : index
    %75 = vector.load %arg8[%c0_71, %c145] : memref<8x768xf32, #tpu.memory_space<vmem>>, vector<8x512xf32>
    %c8 = arith.constant 8 : index
    %c0_72 = arith.constant 0 : index
    %76 = vector.load %arg6[%c8, %c0_72] : memref<9x512xf32, #tpu.memory_space<vmem>>, vector<1x512xf32>
    %77 = vector.broadcast %76 : vector<1x512xf32> to vector<8x512xf32>
    %78 = arith.mulf %75, %77 : vector<8x512xf32>
    %c0_73 = arith.constant 0 : index
    %c8_74 = arith.constant 8 : index
    %c0_75 = arith.constant 0 : index
    %c0_76 = arith.constant 0 : index
    %79 = vector.load %arg2[%c0_73, %c8_74, %c0_75, %c0_76] : memref<2x9x4x8xf32, #tpu.memory_space<vmem>>, vector<1x1x4x8xf32>
    %80 = vector.shape_cast %79 : vector<1x1x4x8xf32> to vector<4x8xf32>
    %cst_77 = arith.constant dense<0.000000e+00> : vector<4x512xf32>
    %81 = tpu.matmul %80, %78, %cst_77 {dimension_numbers = #tpu.dot_dimension_numbers<[1], [0], [0], [1], [0, 0, 1, 1], [], []>} : vector<4x8xf32>, vector<8x512xf32>, vector<4x512xf32> -> vector<4x512xf32>
    %82 = arith.addf %74, %81 : vector<4x512xf32>
    %cst_78 = arith.constant 0.000000e+00 : f32
    %83 = vector.broadcast %cst_78 : f32 to vector<4x512xf32>
    %84 = arith.maximumf %82, %83 : vector<4x512xf32>
    %c0_79 = arith.constant 0 : index
    %c0_80 = arith.constant 0 : index
    %c0_81 = arith.constant 0 : index
    %85 = vector.load %arg4[%c0_79, %c0_80, %c0_81] : memref<2x8x4xf32, #tpu.memory_space<vmem>>, vector<1x8x4xf32>
    %86 = vector.shape_cast %85 : vector<1x8x4xf32> to vector<8x4xf32>
    %cst_82 = arith.constant dense<0.000000e+00> : vector<8x512xf32>
    %87 = tpu.matmul %86, %84, %cst_82 {dimension_numbers = #tpu.dot_dimension_numbers<[1], [0], [0], [1], [0, 0, 1, 1], [], []>} : vector<8x4xf32>, vector<4x512xf32>, vector<8x512xf32> -> vector<8x512xf32>
    %c0_83 = arith.constant 0 : index
    %c0_84 = arith.constant 0 : index
    %c0_85 = arith.constant 0 : index
    %88 = vector.load %arg5[%c0_83, %c0_84, %c0_85] : memref<2x8x1xf32, #tpu.memory_space<vmem>>, vector<1x8x1xf32>
    %89 = vector.shape_cast %88 : vector<1x8x1xf32> to vector<8x1xf32>
    %90 = vector.broadcast %89 : vector<8x1xf32> to vector<8x512xf32>
    %91 = arith.addf %87, %90 : vector<8x512xf32>
    %92 = arith.addf %7, %91 : vector<8x512xf32>
    %c0_86 = arith.constant 0 : index
    %c0_87 = arith.constant 0 : index
    %93 = vector.load %arg9[%c0_86, %c0_87] : memref<8x512xf32, #tpu.memory_space<vmem>>, vector<8x512xf32>
    tpu.vector_store %arg9[%c0_86, %c0_87], %92 {strides = array<i32>} : memref<8x512xf32, #tpu.memory_space<vmem>>, vector<8x512xf32>,
    %c0_88 = arith.constant 0 : index
    %c0_89 = arith.constant 0 : index
    %94 = vector.load %arg9[%c0_88, %c0_89] : memref<8x512xf32, #tpu.memory_space<vmem>>, vector<8x512xf32>
    %cst_90 = arith.constant 0.000000e+00 : f32
    %95 = vector.broadcast %cst_90 : f32 to vector<8x512xf32>
    %96 = arith.maximumf %94, %95 : vector<8x512xf32>
    %c0_91 = arith.constant 0 : index
    %c128_92 = arith.constant 128 : index
    %97 = vector.load %arg8[%c0_91, %c128_92] : memref<8x768xf32, #tpu.memory_space<vmem>>, vector<8x512xf32>
    tpu.vector_store %arg8[%c0_91, %c128_92], %96 {strides = array<i32>} : memref<8x768xf32, #tpu.memory_space<vmem>>, vector<8x512xf32>,
    %c1_93 = arith.constant 1 : index
    %c0_94 = arith.constant 0 : index
    %c0_95 = arith.constant 0 : index
    %98 = vector.load %arg3[%c1_93, %c0_94, %c0_95] : memref<2x4x1xf32, #tpu.memory_space<vmem>>, vector<1x4x1xf32>
    %99 = vector.shape_cast %98 : vector<1x4x1xf32> to vector<4x1xf32>
    %c0_96 = arith.constant 0 : index
    %c111_97 = arith.constant 111 : index
    %100 = vector.load %arg8[%c0_96, %c111_97] : memref<8x768xf32, #tpu.memory_space<vmem>>, vector<8x512xf32>
    %c0_98 = arith.constant 0 : index
    %c0_99 = arith.constant 0 : index
    %101 = vector.load %arg6[%c0_98, %c0_99] : memref<9x512xf32, #tpu.memory_space<vmem>>, vector<1x512xf32>
    %102 = vector.broadcast %101 : vector<1x512xf32> to vector<8x512xf32>
    %103 = arith.mulf %100, %102 : vector<8x512xf32>
    %c1_100 = arith.constant 1 : index
    %c0_101 = arith.constant 0 : index
    %c0_102 = arith.constant 0 : index
    %c0_103 = arith.constant 0 : index
    %104 = vector.load %arg2[%c1_100, %c0_101, %c0_102, %c0_103] : memref<2x9x4x8xf32, #tpu.memory_space<vmem>>, vector<1x1x4x8xf32>
    %105 = vector.shape_cast %104 : vector<1x1x4x8xf32> to vector<4x8xf32>
    %cst_104 = arith.constant dense<0.000000e+00> : vector<4x512xf32>
    %106 = tpu.matmul %105, %103, %cst_104 {dimension_numbers = #tpu.dot_dimension_numbers<[1], [0], [0], [1], [0, 0, 1, 1], [], []>} : vector<4x8xf32>, vector<8x512xf32>, vector<4x512xf32> -> vector<4x512xf32>
    %107 = vector.broadcast %99 : vector<4x1xf32> to vector<4x512xf32>
    %108 = arith.addf %107, %106 : vector<4x512xf32>
    %c0_105 = arith.constant 0 : index
    %c112_106 = arith.constant 112 : index
    %109 = vector.load %arg8[%c0_105, %c112_106] : memref<8x768xf32, #tpu.memory_space<vmem>>, vector<8x512xf32>
    %c1_107 = arith.constant 1 : index
    %c0_108 = arith.constant 0 : index
    %110 = vector.load %arg6[%c1_107, %c0_108] : memref<9x512xf32, #tpu.memory_space<vmem>>, vector<1x512xf32>
    %111 = vector.broadcast %110 : vector<1x512xf32> to vector<8x512xf32>
    %112 = arith.mulf %109, %111 : vector<8x512xf32>
    %c1_109 = arith.constant 1 : index
    %c1_110 = arith.constant 1 : index
    %c0_111 = arith.constant 0 : index
    %c0_112 = arith.constant 0 : index
    %113 = vector.load %arg2[%c1_109, %c1_110, %c0_111, %c0_112] : memref<2x9x4x8xf32, #tpu.memory_space<vmem>>, vector<1x1x4x8xf32>
    %114 = vector.shape_cast %113 : vector<1x1x4x8xf32> to vector<4x8xf32>
    %cst_113 = arith.constant dense<0.000000e+00> : vector<4x512xf32>
    %115 = tpu.matmul %114, %112, %cst_113 {dimension_numbers = #tpu.dot_dimension_numbers<[1], [0], [0], [1], [0, 0, 1, 1], [], []>} : vector<4x8xf32>, vector<8x512xf32>, vector<4x512xf32> -> vector<4x512xf32>
    %116 = arith.addf %108, %115 : vector<4x512xf32>
    %c0_114 = arith.constant 0 : index
    %c113_115 = arith.constant 113 : index
    %117 = vector.load %arg8[%c0_114, %c113_115] : memref<8x768xf32, #tpu.memory_space<vmem>>, vector<8x512xf32>
    %c2_116 = arith.constant 2 : index
    %c0_117 = arith.constant 0 : index
    %118 = vector.load %arg6[%c2_116, %c0_117] : memref<9x512xf32, #tpu.memory_space<vmem>>, vector<1x512xf32>
    %119 = vector.broadcast %118 : vector<1x512xf32> to vector<8x512xf32>
    %120 = arith.mulf %117, %119 : vector<8x512xf32>
    %c1_118 = arith.constant 1 : index
    %c2_119 = arith.constant 2 : index
    %c0_120 = arith.constant 0 : index
    %c0_121 = arith.constant 0 : index
    %121 = vector.load %arg2[%c1_118, %c2_119, %c0_120, %c0_121] : memref<2x9x4x8xf32, #tpu.memory_space<vmem>>, vector<1x1x4x8xf32>
    %122 = vector.shape_cast %121 : vector<1x1x4x8xf32> to vector<4x8xf32>
    %cst_122 = arith.constant dense<0.000000e+00> : vector<4x512xf32>
    %123 = tpu.matmul %122, %120, %cst_122 {dimension_numbers = #tpu.dot_dimension_numbers<[1], [0], [0], [1], [0, 0, 1, 1], [], []>} : vector<4x8xf32>, vector<8x512xf32>, vector<4x512xf32> -> vector<4x512xf32>
    %124 = arith.addf %116, %123 : vector<4x512xf32>
    %c0_123 = arith.constant 0 : index
    %c127_124 = arith.constant 127 : index
    %125 = vector.load %arg8[%c0_123, %c127_124] : memref<8x768xf32, #tpu.memory_space<vmem>>, vector<8x512xf32>
    %c3_125 = arith.constant 3 : index
    %c0_126 = arith.constant 0 : index
    %126 = vector.load %arg6[%c3_125, %c0_126] : memref<9x512xf32, #tpu.memory_space<vmem>>, vector<1x512xf32>
    %127 = vector.broadcast %126 : vector<1x512xf32> to vector<8x512xf32>
    %128 = arith.mulf %125, %127 : vector<8x512xf32>
    %c1_127 = arith.constant 1 : index
    %c3_128 = arith.constant 3 : index
    %c0_129 = arith.constant 0 : index
    %c0_130 = arith.constant 0 : index
    %129 = vector.load %arg2[%c1_127, %c3_128, %c0_129, %c0_130] : memref<2x9x4x8xf32, #tpu.memory_space<vmem>>, vector<1x1x4x8xf32>
    %130 = vector.shape_cast %129 : vector<1x1x4x8xf32> to vector<4x8xf32>
    %cst_131 = arith.constant dense<0.000000e+00> : vector<4x512xf32>
    %131 = tpu.matmul %130, %128, %cst_131 {dimension_numbers = #tpu.dot_dimension_numbers<[1], [0], [0], [1], [0, 0, 1, 1], [], []>} : vector<4x8xf32>, vector<8x512xf32>, vector<4x512xf32> -> vector<4x512xf32>
    %132 = arith.addf %124, %131 : vector<4x512xf32>
    %c0_132 = arith.constant 0 : index
    %c128_133 = arith.constant 128 : index
    %133 = vector.load %arg8[%c0_132, %c128_133] : memref<8x768xf32, #tpu.memory_space<vmem>>, vector<8x512xf32>
    %c1_134 = arith.constant 1 : index
    %c4_135 = arith.constant 4 : index
    %c0_136 = arith.constant 0 : index
    %c0_137 = arith.constant 0 : index
    %134 = vector.load %arg2[%c1_134, %c4_135, %c0_136, %c0_137] : memref<2x9x4x8xf32, #tpu.memory_space<vmem>>, vector<1x1x4x8xf32>
    %135 = vector.shape_cast %134 : vector<1x1x4x8xf32> to vector<4x8xf32>
    %cst_138 = arith.constant dense<0.000000e+00> : vector<4x512xf32>
    %136 = tpu.matmul %135, %133, %cst_138 {dimension_numbers = #tpu.dot_dimension_numbers<[1], [0], [0], [1], [0, 0, 1, 1], [], []>} : vector<4x8xf32>, vector<8x512xf32>, vector<4x512xf32> -> vector<4x512xf32>
    %137 = arith.addf %132, %136 : vector<4x512xf32>
    %c0_139 = arith.constant 0 : index
    %c129_140 = arith.constant 129 : index
    %138 = vector.load %arg8[%c0_139, %c129_140] : memref<8x768xf32, #tpu.memory_space<vmem>>, vector<8x512xf32>
    %c5_141 = arith.constant 5 : index
    %c0_142 = arith.constant 0 : index
    %139 = vector.load %arg6[%c5_141, %c0_142] : memref<9x512xf32, #tpu.memory_space<vmem>>, vector<1x512xf32>
    %140 = vector.broadcast %139 : vector<1x512xf32> to vector<8x512xf32>
    %141 = arith.mulf %138, %140 : vector<8x512xf32>
    %c1_143 = arith.constant 1 : index
    %c5_144 = arith.constant 5 : index
    %c0_145 = arith.constant 0 : index
    %c0_146 = arith.constant 0 : index
    %142 = vector.load %arg2[%c1_143, %c5_144, %c0_145, %c0_146] : memref<2x9x4x8xf32, #tpu.memory_space<vmem>>, vector<1x1x4x8xf32>
    %143 = vector.shape_cast %142 : vector<1x1x4x8xf32> to vector<4x8xf32>
    %cst_147 = arith.constant dense<0.000000e+00> : vector<4x512xf32>
    %144 = tpu.matmul %143, %141, %cst_147 {dimension_numbers = #tpu.dot_dimension_numbers<[1], [0], [0], [1], [0, 0, 1, 1], [], []>} : vector<4x8xf32>, vector<8x512xf32>, vector<4x512xf32> -> vector<4x512xf32>
    %145 = arith.addf %137, %144 : vector<4x512xf32>
    %c0_148 = arith.constant 0 : index
    %c143_149 = arith.constant 143 : index
    %146 = vector.load %arg8[%c0_148, %c143_149] : memref<8x768xf32, #tpu.memory_space<vmem>>, vector<8x512xf32>
    %c6_150 = arith.constant 6 : index
    %c0_151 = arith.constant 0 : index
    %147 = vector.load %arg6[%c6_150, %c0_151] : memref<9x512xf32, #tpu.memory_space<vmem>>, vector<1x512xf32>
    %148 = vector.broadcast %147 : vector<1x512xf32> to vector<8x512xf32>
    %149 = arith.mulf %146, %148 : vector<8x512xf32>
    %c1_152 = arith.constant 1 : index
    %c6_153 = arith.constant 6 : index
    %c0_154 = arith.constant 0 : index
    %c0_155 = arith.constant 0 : index
    %150 = vector.load %arg2[%c1_152, %c6_153, %c0_154, %c0_155] : memref<2x9x4x8xf32, #tpu.memory_space<vmem>>, vector<1x1x4x8xf32>
    %151 = vector.shape_cast %150 : vector<1x1x4x8xf32> to vector<4x8xf32>
    %cst_156 = arith.constant dense<0.000000e+00> : vector<4x512xf32>
    %152 = tpu.matmul %151, %149, %cst_156 {dimension_numbers = #tpu.dot_dimension_numbers<[1], [0], [0], [1], [0, 0, 1, 1], [], []>} : vector<4x8xf32>, vector<8x512xf32>, vector<4x512xf32> -> vector<4x512xf32>
    %153 = arith.addf %145, %152 : vector<4x512xf32>
    %c0_157 = arith.constant 0 : index
    %c144_158 = arith.constant 144 : index
    %154 = vector.load %arg8[%c0_157, %c144_158] : memref<8x768xf32, #tpu.memory_space<vmem>>, vector<8x512xf32>
    %c7_159 = arith.constant 7 : index
    %c0_160 = arith.constant 0 : index
    %155 = vector.load %arg6[%c7_159, %c0_160] : memref<9x512xf32, #tpu.memory_space<vmem>>, vector<1x512xf32>
    %156 = vector.broadcast %155 : vector<1x512xf32> to vector<8x512xf32>
    %157 = arith.mulf %154, %156 : vector<8x512xf32>
    %c1_161 = arith.constant 1 : index
    %c7_162 = arith.constant 7 : index
    %c0_163 = arith.constant 0 : index
    %c0_164 = arith.constant 0 : index
    %158 = vector.load %arg2[%c1_161, %c7_162, %c0_163, %c0_164] : memref<2x9x4x8xf32, #tpu.memory_space<vmem>>, vector<1x1x4x8xf32>
    %159 = vector.shape_cast %158 : vector<1x1x4x8xf32> to vector<4x8xf32>
    %cst_165 = arith.constant dense<0.000000e+00> : vector<4x512xf32>
    %160 = tpu.matmul %159, %157, %cst_165 {dimension_numbers = #tpu.dot_dimension_numbers<[1], [0], [0], [1], [0, 0, 1, 1], [], []>} : vector<4x8xf32>, vector<8x512xf32>, vector<4x512xf32> -> vector<4x512xf32>
    %161 = arith.addf %153, %160 : vector<4x512xf32>
    %c0_166 = arith.constant 0 : index
    %c145_167 = arith.constant 145 : index
    %162 = vector.load %arg8[%c0_166, %c145_167] : memref<8x768xf32, #tpu.memory_space<vmem>>, vector<8x512xf32>
    %c8_168 = arith.constant 8 : index
    %c0_169 = arith.constant 0 : index
    %163 = vector.load %arg6[%c8_168, %c0_169] : memref<9x512xf32, #tpu.memory_space<vmem>>, vector<1x512xf32>
    %164 = vector.broadcast %163 : vector<1x512xf32> to vector<8x512xf32>
    %165 = arith.mulf %162, %164 : vector<8x512xf32>
    %c1_170 = arith.constant 1 : index
    %c8_171 = arith.constant 8 : index
    %c0_172 = arith.constant 0 : index
    %c0_173 = arith.constant 0 : index
    %166 = vector.load %arg2[%c1_170, %c8_171, %c0_172, %c0_173] : memref<2x9x4x8xf32, #tpu.memory_space<vmem>>, vector<1x1x4x8xf32>
    %167 = vector.shape_cast %166 : vector<1x1x4x8xf32> to vector<4x8xf32>
    %cst_174 = arith.constant dense<0.000000e+00> : vector<4x512xf32>
    %168 = tpu.matmul %167, %165, %cst_174 {dimension_numbers = #tpu.dot_dimension_numbers<[1], [0], [0], [1], [0, 0, 1, 1], [], []>} : vector<4x8xf32>, vector<8x512xf32>, vector<4x512xf32> -> vector<4x512xf32>
    %169 = arith.addf %161, %168 : vector<4x512xf32>
    %cst_175 = arith.constant 0.000000e+00 : f32
    %170 = vector.broadcast %cst_175 : f32 to vector<4x512xf32>
    %171 = arith.maximumf %169, %170 : vector<4x512xf32>
    %c1_176 = arith.constant 1 : index
    %c0_177 = arith.constant 0 : index
    %c0_178 = arith.constant 0 : index
    %172 = vector.load %arg4[%c1_176, %c0_177, %c0_178] : memref<2x8x4xf32, #tpu.memory_space<vmem>>, vector<1x8x4xf32>
    %173 = vector.shape_cast %172 : vector<1x8x4xf32> to vector<8x4xf32>
    %cst_179 = arith.constant dense<0.000000e+00> : vector<8x512xf32>
    %174 = tpu.matmul %173, %171, %cst_179 {dimension_numbers = #tpu.dot_dimension_numbers<[1], [0], [0], [1], [0, 0, 1, 1], [], []>} : vector<8x4xf32>, vector<4x512xf32>, vector<8x512xf32> -> vector<8x512xf32>
    %c1_180 = arith.constant 1 : index
    %c0_181 = arith.constant 0 : index
    %c0_182 = arith.constant 0 : index
    %175 = vector.load %arg5[%c1_180, %c0_181, %c0_182] : memref<2x8x1xf32, #tpu.memory_space<vmem>>, vector<1x8x1xf32>
    %176 = vector.shape_cast %175 : vector<1x8x1xf32> to vector<8x1xf32>
    %177 = vector.broadcast %176 : vector<8x1xf32> to vector<8x512xf32>
    %178 = arith.addf %174, %177 : vector<8x512xf32>
    %179 = arith.addf %94, %178 : vector<8x512xf32>
    %c0_183 = arith.constant 0 : index
    %c0_184 = arith.constant 0 : index
    %180 = vector.load %arg9[%c0_183, %c0_184] : memref<8x512xf32, #tpu.memory_space<vmem>>, vector<8x512xf32>
    tpu.vector_store %arg9[%c0_183, %c0_184], %179 {strides = array<i32>} : memref<8x512xf32, #tpu.memory_space<vmem>>, vector<8x512xf32>,
    %c0_185 = arith.constant 0 : index
    %c0_186 = arith.constant 0 : index
    %181 = vector.load %arg9[%c0_185, %c0_186] : memref<8x512xf32, #tpu.memory_space<vmem>>, vector<8x512xf32>
    %c0_187 = arith.constant 0 : index
    %c0_188 = arith.constant 0 : index
    %c0_189 = arith.constant 0 : index
    %182 = vector.load %arg7[%c0_187, %c0_188, %c0_189] : memref<1x8x512xf32, #tpu.memory_space<vmem>>, vector<1x8x512xf32>
    %183 = vector.shape_cast %182 : vector<1x8x512xf32> to vector<8x512xf32>
    %184 = vector.shape_cast %181 : vector<8x512xf32> to vector<1x8x512xf32>
    tpu.vector_store %arg7[%c0_187, %c0_188, %c0_189], %184 {strides = array<i32>} : memref<1x8x512xf32, #tpu.memory_space<vmem>>, vector<1x8x512xf32>,
    return
  }
  func.func @transform_0(%arg0: i32) -> (i32, i32, i32) {
    %c0_i32 = arith.constant 0 : i32
    %c0_i32_0 = arith.constant 0 : i32
    %c0_i32_1 = arith.constant 0 : i32
    return %arg0, %c0_i32, %c0_i32_0 : i32, i32, i32
  }
  func.func @transform_1(%arg0: i32) -> (i32, i32, i32, i32) {
    %c0_i32 = arith.constant 0 : i32
    %c0_i32_0 = arith.constant 0 : i32
    %c0_i32_1 = arith.constant 0 : i32
    %c0_i32_2 = arith.constant 0 : i32
    %c0_i32_3 = arith.constant 0 : i32
    return %c0_i32, %c0_i32_0, %c0_i32_1, %c0_i32_2 : i32, i32, i32, i32
  }
  func.func @transform_2(%arg0: i32) -> (i32, i32, i32) {
    %c0_i32 = arith.constant 0 : i32
    %c0_i32_0 = arith.constant 0 : i32
    %c0_i32_1 = arith.constant 0 : i32
    %c0_i32_2 = arith.constant 0 : i32
    return %c0_i32, %c0_i32_0, %c0_i32_1 : i32, i32, i32
  }
  func.func @transform_3(%arg0: i32) -> (i32, i32, i32) {
    %c0_i32 = arith.constant 0 : i32
    %c0_i32_0 = arith.constant 0 : i32
    %c0_i32_1 = arith.constant 0 : i32
    %c0_i32_2 = arith.constant 0 : i32
    return %c0_i32, %c0_i32_0, %c0_i32_1 : i32, i32, i32
  }
  func.func @transform_4(%arg0: i32) -> (i32, i32, i32) {
    %c0_i32 = arith.constant 0 : i32
    %c0_i32_0 = arith.constant 0 : i32
    %c0_i32_1 = arith.constant 0 : i32
    %c0_i32_2 = arith.constant 0 : i32
    return %c0_i32, %c0_i32_0, %c0_i32_1 : i32, i32, i32
  }
  func.func @transform_5(%arg0: i32) -> (i32, i32) {
    %c0_i32 = arith.constant 0 : i32
    %c0_i32_0 = arith.constant 0 : i32
    %c0_i32_1 = arith.constant 0 : i32
    return %c0_i32, %c0_i32_0 : i32, i32
  }
  func.func @transform_6(%arg0: i32) -> (i32, i32, i32) {
    %c0_i32 = arith.constant 0 : i32
    %c0_i32_0 = arith.constant 0 : i32
    %c0_i32_1 = arith.constant 0 : i32
    return %arg0, %c0_i32, %c0_i32_0 : i32, i32, i32
  }
}

</mosaic_0001>

<bundles_post_ra>
// kernel: tpu_custom_call.1
= control target key start
LH: loop header
LB: loop body
LE: loop exit
PB: predicated region body
PF: predicated region fallthrough
CT: control target
= control target key end

     0   :  { %11 = vsyncpa [#allocation5], 0  ;;  %s5668_s0 = inlined_call_operand.vmem [shape: f32[2,8,512], index: 0, kind: input, shape index: {}]   ;;  %s5669_s1 = inlined_call_operand.vmem [shape: f32[2,9,4,8], index: 1, kind: input, shape index: {}]   ;;  %s5670_s2 = inlined_call_operand.vmem [shape: f32[2,4,1], index: 2, kind: input, shape index: {}]   ;;  %s5671_s3 = inlined_call_operand.vmem [shape: f32[2,8,4], index: 3, kind: input, shape index: {}]   ;;  %s5672_s4 = inlined_call_operand.vmem [shape: f32[2,8,1], index: 4, kind: input, shape index: {}]   ;;  %s5673_s5 = inlined_call_operand.vmem [shape: f32[9,512], index: 5, kind: input, shape index: {}]   ;;  %s5674_s6 = inlined_call_operand.hbm [shape: f32[2,8,512], index: 6, kind: output, shape index: {}]  }
   0x1   :  { %13 = vsyncpa [#allocation5 + $0x1], 0  ;;  %s4736_s21 = smov 0   ;;  %s4738_s22 = smov 0  }
   0x2   :  { %s4740_s23 = smov 0   ;;  %s4742_s24 = smov 0  }
   0x3 LB: > { %s4757_s25 = sadd.s32 4294967295, %s4688_s24   ;;  %s4480_s26 = sadd.s32 4294967294, %s4688_s24   ;;  %s4688_s24 = sphi %s4742_s24, %s5680_s24   ;;  %s4684_s23 = sphi %s4740_s23, %s5679_s23   ;;  %s4680_s22 = sphi %s4738_s22, %s5678_s22   ;;  %s4676_s21 = sphi %s4736_s21, %s5677_s21  }
   0x4   : > { %s4761_s27 = sadd.s32 1, %s4688_s24   ;;  %s157_s28 = sadd.s32 1, %s4684_s23 }
   0x5   : > { %s154_s29 = ssub.s32 %s4688_s24, %s4761_s27  ;;  %p167_p0 = scmp.ne.s32.totalorder %s4684_s23, %s4680_s22 }
   0x6   : > { %p155_p1 = scmp.eq.s32.totalorder %s154_s29, 0  ;;  %p168_p2 = scmp.eq.s32.totalorder %s4757_s25, 1 }
   0x7   : > { %p173_p3 = scmp.ne.s32.totalorder %s4680_s22, %s4676_s21  ;;  %p174_p4 = scmp.eq.s32.totalorder %s4480_s26, 1 }
   0x8   : > { %s4772_s30 = scalar_select %p155_p1, %s4684_s23, %s157_s28  }
   0x9   : > { %p4774_p5 = por %p168_p2, %p167_p0  ;;  %p4778_p6 = por %p174_p4, %p173_p3 }
   0xa   : > { %p4483_p7 = scmp.ge.s32.totalorder %s4688_s24, 1  ;;  %p215_p8 = scmp.lt.s32.totalorder %s4688_s24, 3 }
   0xc   : > { %p216_p9 = pnand %p4483_p7, %p215_p8 }
   0xd   : > { %s4690_s11 = smov (!%p216_p9), 111   ;;  %s4691_s14 = smov (!%p216_p9), 112  }
   0xe   : > { %219 = sbr.rel (%p216_p9) target bundleno = 1355 (0x54b), region = 44  ;;  %s4692_s17 = smov (!%p216_p9), 113  }
   0xf   : > { %s4693_s20 = smov (!%p216_p9), 127   ;;  %s4694_s29 = smov (!%p216_p9), 1  }
  0x10   : > { %s4695_s12 = smov (!%p216_p9), 15   ;;  %s4696_s16 = smov (!%p216_p9), 16  }
  0x11   : > { %s4697_s26 = smov (!%p216_p9), 17   ;;  %p245_p10 = scmp.lt.s32.totalorder (!%p216_p9), %s4757_s25, 1 }
  0x12   : > { %s242_s10 = sand.u32 (!%p216_p9), 1, %s4680_s22   ;;  %s4575_s18 = sshll.u32 (!%p216_p9), %s4757_s25, 9 }
  0x13   : > { %v280_v0 = vlaneseq  ;;  %v278_v2 = vld [vmem:[%s5673_s5] ss:$8 sm:$0xf]  ;;  %v4489_v11 = vld [vmem:[%s5673_s5 + $0x1] ss:$8 sm:$0xf] }
  0x14   : > { %v4493_v16 = vld [vmem:[%s5673_s5 + $0x2] ss:$8 sm:$0xf]  ;;  %v4497_v21 = vld [vmem:[%s5673_s5 + $0x3] ss:$8 sm:$0xf] }
  0x15   : > { %v281_v1 = vshrl.u32 %v280_v0, 7  ;;  %v4504_v26 = vld [vmem:[%s5673_s5 + $0x5] ss:$8 sm:$0xf]  ;;  %s246_s28 = scalar_select %p245_p10, %s4757_s25, 1  ;;  %vm304_vm0 = vcmask 908288  }
  0x16   : > { %v4508_v31 = vld [vmem:[%s5673_s5 + $0x6] ss:$8 sm:$0xf]  ;;  %v4512_v36 = vld [vmem:[%s5673_s5 + $0x7] ss:$8 sm:$0xf] }
  0x17   : > { %v4787_v3 = vsub.s32 2, %v281_v1  ;;  %v4789_v4 = vsub.s32 0, %v281_v1  ;;  %v4791_v5 = vsub.s32 3, %v281_v1  ;;  %v4793_v6 = vsub.s32 1, %v281_v1  ;;  %s4574_s9 = sshll.u32 %s246_s28, 5  ;;  %s4484_s13 = sshll.u32 %s242_s10, 5 }
  0x18   : > { %v4516_v41 = vld [vmem:[%s5673_s5 + $0x20] ss:$8 sm:$0xf]  ;;  %s4885_s15 = scalar_lea.vmem %s5668_s0, %s4574_s9  ;;  %vm525_vm1 = vcmask 916480   ;;  %vm741_vm2 = vcmask 924672   ;;  %vm957_vm3 = vcmask 1039360  }
  0x19   : > { %v291_v7 = vrot.slane %v278_v2, %v4787_v3  ;;  %v283_v8 = vrot.slane %v278_v2, %v4789_v4  ;;  %v295_v9 = vrot.slane %v278_v2, %v4791_v5  ;;  %v287_v10 = vrot.slane %v278_v2, %v4793_v6  ;;  %v255_v46 = vld [vmem:[%s4885_s15 + $0x18] sm:$0xff]  ;;  %s244_s19 = scalar_lea.vmem [#allocation4], %s4484_s13  ;;  %s4407_s25 = scalar_lea.sflag [#allocation5], %s242_s10 }
  0x1a   : > { %v508_v12 = vrot.slane %v4489_v11, %v4793_v6  ;;  %v504_v13 = vrot.slane %v4489_v11, %v4789_v4  ;;  %v516_v14 = vrot.slane %v4489_v11, %v4791_v5  ;;  %v512_v15 = vrot.slane %v4489_v11, %v4787_v3  ;;  %v4919_v11 = vld [vmem:[%s4885_s15] sm:$0xff]  ;;  %s4421_s28 = sshll.u32 %s244_s19, 4  ;;  %s4422_s28 = int_to_ptr.vmem [resolvable:$true] %s4421_s28 }
  0x1b   : > { %300 = vrot.lane.b32.xlu1 %v291_v7, %s4690_s11  ;;  %296 = vrot.lane.b32.xlu0 %v283_v8, %s4690_s11  ;;  %v724_v17 = vrot.slane %v4493_v16, %v4793_v6  ;;  %v720_v18 = vrot.slane %v4493_v16, %v4789_v4  ;;  %v732_v19 = vrot.slane %v4493_v16, %v4791_v5  ;;  %v4890_v50 = vmax.f32 %v255_v46, 0.0 }
  0x1c   : > { %v728_v20 = vrot.slane %v4493_v16, %v4787_v3  ;;  %v940_v22 = vrot.slane %v4497_v21, %v4793_v6  ;;  %v936_v23 = vrot.slane %v4497_v21, %v4789_v4  ;;  %v948_v24 = vrot.slane %v4497_v21, %v4791_v5 }
  0x1d   : > { %v944_v25 = vrot.slane %v4497_v21, %v4787_v3  ;;  %v1312_v27 = vrot.slane %v4504_v26, %v4793_v6  ;;  %v1308_v28 = vrot.slane %v4504_v26, %v4789_v4  ;;  %v1320_v29 = vrot.slane %v4504_v26, %v4791_v5 }
  0x1e   : > { %v1316_v30 = vrot.slane %v4504_v26, %v4787_v3  ;;  %v1526_v32 = vrot.slane %v4508_v31, %v4793_v6  ;;  %v1522_v33 = vrot.slane %v4508_v31, %v4789_v4  ;;  %v1534_v34 = vrot.slane %v4508_v31, %v4791_v5 }
  0x1f   : > { %302 = vrot.lane.b32.xlu1 %v295_v9, %s4690_s11  ;;  %298 = vrot.lane.b32.xlu0 %v287_v10, %s4690_s11  ;;  %v1530_v35 = vrot.slane %v4508_v31, %v4787_v3  ;;  %v1736_v37 = vrot.slane %v4512_v36, %v4789_v4  ;;  %v1740_v38 = vrot.slane %v4512_v36, %v4793_v6  ;;  %v4956_v31 = vld [vmem:[%s4885_s15 + $0x10] sm:$0xff]  ;;  %vm988_vm4 = vcmask 7168  }
  0x20   : > { %v1744_v39 = vrot.slane %v4512_v36, %v4787_v3  ;;  %v1748_v40 = vrot.slane %v4512_v36, %v4791_v5  ;;  %v1950_v42 = vrot.slane %v4516_v41, %v4789_v4  ;;  %v1954_v43 = vrot.slane %v4516_v41, %v4793_v6 }
  0x21   : > { %v1958_v44 = vrot.slane %v4516_v41, %v4787_v3  ;;  %v1962_v45 = vrot.slane %v4516_v41, %v4791_v5  ;;  %vm772_vm5 = vcmask 121856   ;;  %vm556_vm6 = vcmask 130048  }
  0x22   : > { %vm334_vm7 = vcmask 138240   ;;  %vm343_vm8 = vcmask 64512   ;;  %vm2173_vm9 = vcmask 1043456   ;;  %vm2169_vm10 = vcmask 31744  }
  0x23   : > { %519 = vrot.lane.b32.xlu1 %v508_v12, %s4691_s14  ;;  %517 = vrot.lane.b32.xlu0 %v504_v13, %s4691_s14  ;;  %v4924_v13 = vmax.f32 %v4919_v11, 0.0 }
  0x27   : > { %523 = vrot.lane.b32.xlu1 %v516_v14, %s4691_s14  ;;  %521 = vrot.lane.b32.xlu0 %v512_v15, %s4691_s14 }
  0x2b   : > { %735 = vrot.lane.b32.xlu1 %v724_v17, %s4692_s17  ;;  %733 = vrot.lane.b32.xlu0 %v720_v18, %s4692_s17 }
  0x2f   : > { %739 = vrot.lane.b32.xlu1 %v732_v19, %s4692_s17  ;;  %737 = vrot.lane.b32.xlu0 %v728_v20, %s4692_s17  ;;  %v4939_v20 = vld [vmem:[%s4885_s15 + $0x8] sm:$0xff] }
  0x33   : > { %951 = vrot.lane.b32.xlu1 %v940_v22, %s4693_s20  ;;  %949 = vrot.lane.b32.xlu0 %v936_v23, %s4693_s20 }
  0x37   : > { %955 = vrot.lane.b32.xlu1 %v948_v24, %s4693_s20  ;;  %953 = vrot.lane.b32.xlu0 %v944_v25, %s4693_s20  ;;  %v4946_v24 = vmax.f32 %v4939_v20, 0.0 }
  0x3b   : > { %1323 = vrot.lane.b32.xlu1 %v1312_v27, %s4694_s29  ;;  %1321 = vrot.lane.b32.xlu0 %v1308_v28, %s4694_s29 }
  0x3f   : > { %1327 = vrot.lane.b32.xlu1 %v1320_v29, %s4694_s29  ;;  %1325 = vrot.lane.b32.xlu0 %v1316_v30, %s4694_s29 }
  0x43   : > { %1537 = vrot.lane.b32.xlu1 %v1526_v32, %s4695_s12  ;;  %1535 = vrot.lane.b32.xlu0 %v1522_v33, %s4695_s12  ;;  %v4698_v32 = vmov 0.0  }
  0x44   : > { %482 = vmatprep.mubr.f32.mxu1 %v4698_v32  ;;  %411 = vmatprep.mubr.f32.mxu0 %v4698_v32 }
  0x47   : > { %1541 = vrot.lane.b32.xlu1 %v1534_v34, %s4695_s12  ;;  %1539 = vrot.lane.b32.xlu0 %v1530_v35, %s4695_s12  ;;  %v4965_v35 = vmax.f32 %v4956_v31, 0.0 }
  0x4b   : > { %1749 = vrot.lane.b32.xlu0 %v1736_v37, %s4696_s16  ;;  %1751 = vrot.lane.b32.xlu1 %v1740_v38, %s4696_s16 }
  0x4f   : > { %1753 = vrot.lane.b32.xlu0 %v1744_v39, %s4696_s16  ;;  %1755 = vrot.lane.b32.xlu1 %v1748_v40, %s4696_s16 }
  0x53   : > { %1963 = vrot.lane.b32.xlu0 %v1950_v42, %s4697_s26  ;;  %1965 = vrot.lane.b32.xlu1 %v1954_v43, %s4697_s26 }
  0x57   : > { %1967 = vrot.lane.b32.xlu0 %v1958_v44, %s4697_s26  ;;  %1969 = vrot.lane.b32.xlu1 %v1962_v45, %s4697_s26 }
  0x8d   : > { %v4888_v47 = vpop.permute.xlu1 %300  ;;  %v297_v48 = vpop.permute.xlu0 %296 }
  0x8e   : > { %v313_v49 = vmul.f32 0.0, %v297_v48 }
  0x90   : > { %324 = vrot.lane.b32.xlu0 %v313_v49, %s4697_s26 }
  0x91   : > { %v303_v51 = vpop.permute.xlu1 %302  ;;  %v299_v52 = vpop.permute.xlu0 %298 }
  0x92   : > { %v317_v53 = vmul.f32 %v303_v51, %v4890_v50  ;;  %v306_v25 = vsel %vm304_vm0, %v299_v52, %v4888_v47  ;;  %v305_v29 = vsel %vm304_vm0, %v297_v48, %v299_v52  ;;  %v307_v36 = vsel %vm304_vm0, %v4888_v47, %v303_v51 }
  0x93   : > { %v315_v28 = vmul.f32 %v306_v25, %v4946_v24  ;;  %v314_v34 = vmul.f32 %v305_v29, %v4924_v13  ;;  %v316_v39 = vmul.f32 %v307_v36, %v4965_v35  ;;  %v4699_v36 = vmov 0  }
  0x94   : > { %332 = vrot.lane.b32.xlu1 %v317_v53, %s4697_s26  ;;  %4625 = vset.pattern.permute.xlu0 %v4699_v36 }
  0x95   : > { %v4895_v54 = vpop.permute.xlu1 %519  ;;  %v518_v55 = vpop.permute.xlu0 %517  ;;  %4626 = vset.pattern.permute.xlu1 %v4699_v36 }
  0x96   : > { %v534_v56 = vmul.f32 0.0, %v518_v55  ;;  %v526_v30 = vsel %vm525_vm1, %v518_v55, %v4895_v54 }
  0x97   : > { %v535_v33 = vmul.f32 %v526_v30, %v4924_v13 }
  0x98   : > { %546 = vrot.lane.b32.xlu1 %v534_v56, %s4696_s16 }
  0x99   : > { %v524_v57 = vpop.permute.xlu1 %523  ;;  %v522_v58 = vpop.permute.xlu0 %521 }
  0x9a   : > { %v538_v59 = vmul.f32 %v524_v57, %v4890_v50  ;;  %v528_v37 = vsel %vm525_vm1, %v522_v58, %v524_v57  ;;  %v527_v40 = vsel %vm525_vm1, %v4895_v54, %v522_v58 }
  0x9b   : > { %v537_v38 = vmul.f32 %v528_v37, %v4965_v35  ;;  %v536_v43 = vmul.f32 %v527_v40, %v4946_v24  ;;  %v272_v40 = vld [vmem:[%s5670_s2] sm:$0xf] }
  0x9c   : > { %554 = vrot.lane.b32.xlu0 %v538_v59, %s4696_s16 }
  0x9d   : > { %v4900_v60 = vpop.permute.xlu1 %735  ;;  %v4902_v61 = vpop.permute.xlu0 %733 }
  0x9e   : > { %v750_v62 = vmul.f32 0.0, %v4902_v61  ;;  %v742_v44 = vsel %vm741_vm2, %v4902_v61, %v4900_v60 }
  0x9f   : > { %v751_v47 = vmul.f32 %v742_v44, %v4924_v13 }
  0xa0   : > { %762 = vrot.lane.b32.xlu0 %v750_v62, %s4695_s12 }
  0xa1   : > { %v4906_v63 = vpop.permute.xlu1 %739  ;;  %v4908_v0 = vpop.permute.xlu0 %737 }
  0xa2   : > { %v754_v1 = vmul.f32 %v4906_v63, %v4890_v50  ;;  %v743_v41 = vsel %vm741_vm2, %v4900_v60, %v4908_v0  ;;  %v744_v48 = vsel %vm741_vm2, %v4908_v0, %v4906_v63 }
  0xa3   : > { %v752_v42 = vmul.f32 %v743_v41, %v4946_v24  ;;  %v753_v53 = vmul.f32 %v744_v48, %v4965_v35 }
  0xa4   : > { %770 = vrot.lane.b32.xlu1 %v754_v1, %s4695_s12 }
  0xa5   : > { %v4913_v2 = vpop.permute.xlu1 %951  ;;  %v950_v7 = vpop.permute.xlu0 %949 }
  0xa6   : > { %v966_v8 = vmul.f32 0.0, %v950_v7  ;;  %v958_v45 = vsel %vm957_vm3, %v950_v7, %v4913_v2 }
  0xa7   : > { %v967_v46 = vmul.f32 %v958_v45, %v4924_v13 }
  0xa8   : > { %978 = vrot.lane.b32.xlu1 %v966_v8, %s4694_s29 }
  0xa9   : > { %v956_v9 = vpop.permute.xlu1 %955  ;;  %v4916_v10 = vpop.permute.xlu0 %953 }
  0xaa   : > { %v970_v12 = vmul.f32 %v956_v9, %v4890_v50  ;;  %v960_v49 = vsel %vm957_vm3, %v4916_v10, %v956_v9  ;;  %v959_v54 = vsel %vm957_vm3, %v4913_v2, %v4916_v10 }
  0xab   : > { %v969_v52 = vmul.f32 %v960_v49, %v4965_v35  ;;  %v968_v58 = vmul.f32 %v959_v54, %v4946_v24 }
  0xac   : > { %986 = vrot.lane.b32.xlu0 %v970_v12, %s4694_s29 }
  0xad   : > { %v4926_v14 = vpop.permute.xlu1 %1323  ;;  %v4928_v15 = vpop.permute.xlu0 %1321 }
  0xae   : > { %v1337_v16 = vmul.f32 %v4928_v15, %v4924_v13  ;;  %v1329_v60 = vsel %vm988_vm4, %v4928_v15, %v4926_v14 }
  0xaf   : > { %v1338_v63 = vmul.f32 %v1329_v60, %v4946_v24 }
  0xb0   : > { %1349 = vrot.lane.b32.xlu0 %v1337_v16, %s4693_s20 }
  0xb1   : > { %v4933_v17 = vpop.permute.xlu1 %1327  ;;  %v4935_v18 = vpop.permute.xlu0 %1325 }
  0xb2   : > { %v1341_v19 = vmul.f32 0.0, %v4933_v17  ;;  %v1330_v55 = vsel %vm988_vm4, %v4926_v14, %v4935_v18  ;;  %v1331_v1 = vsel %vm988_vm4, %v4935_v18, %v4933_v17 }
  0xb3   : > { %v1339_v57 = vmul.f32 %v1330_v55, %v4965_v35  ;;  %v1340_v10 = vmul.f32 %v1331_v1, %v4890_v50 }
  0xb4   : > { %1357 = vrot.lane.b32.xlu1 %v1341_v19, %s4693_s20 }
  0xb5   : > { %v4942_v21 = vpop.permute.xlu1 %1537  ;;  %v1536_v22 = vpop.permute.xlu0 %1535 }
  0xb6   : > { %v1551_v23 = vmul.f32 %v1536_v22, %v4924_v13  ;;  %v1543_v61 = vsel %vm772_vm5, %v1536_v22, %v4942_v21 }
  0xb7   : > { %v1552_v62 = vmul.f32 %v1543_v61, %v4946_v24 }
  0xb8   : > { %1563 = vrot.lane.b32.xlu1 %v1551_v23, %s4692_s17 }
  0xb9   : > { %v1542_v26 = vpop.permute.xlu1 %1541  ;;  %v1540_v51 = vpop.permute.xlu0 %1539 }
  0xba   : > { %v1555_v27 = vmul.f32 0.0, %v1542_v26  ;;  %v1545_v2 = vsel %vm772_vm5, %v1540_v51, %v1542_v26  ;;  %v1544_v12 = vsel %vm772_vm5, %v4942_v21, %v1540_v51 }
  0xbb   : > { %v1554_v9 = vmul.f32 %v1545_v2, %v4890_v50  ;;  %v1553_v16 = vmul.f32 %v1544_v12, %v4965_v35 }
  0xbc   : > { %328 = vrot.lane.b32.xlu1 %v315_v28, %s4697_s26  ;;  %1571 = vrot.lane.b32.xlu0 %v1555_v27, %s4692_s17 }
  0xbd   : > { %v1750_v56 = vpop.permute.xlu0 %1749  ;;  %v1752_v59 = vpop.permute.xlu1 %1751 }
  0xbe   : > { %v1757_v18 = vsel %vm556_vm6, %v1750_v56, %v1752_v59 }
  0xbf   : > { %v1766_v22 = vmul.f32 %v1757_v18, %v4946_v24 }
  0xc0   : > { %548 = vrot.lane.b32.xlu1 %v535_v33, %s4696_s16  ;;  %326 = vrot.lane.b32.xlu0 %v314_v34, %s4697_s26  ;;  %v1765_v33 = vmul.f32 %v1750_v56, %v4924_v13 }
  0xc1   : > { %v1754_v0 = vpop.permute.xlu0 %1753  ;;  %v1756_v7 = vpop.permute.xlu1 %1755 }
  0xc2   : > { %v1758_v8 = vsel %vm556_vm6, %v1752_v59, %v1754_v0  ;;  %v1769_v19 = vmul.f32 0.0, %v1756_v7  ;;  %v1759_v25 = vsel %vm556_vm6, %v1754_v0, %v1756_v7  ;;  %v318_v59 = vld [vmem:[%s5669_s1] sm:$0xf] }
  0xc3   : > { %v1767_v14 = vmul.f32 %v1758_v8, %v4965_v35  ;;  %v1768_v29 = vmul.f32 %v1759_v25, %v4890_v50 }
  0xc4   : > { %552 = vrot.lane.b32.xlu1 %v537_v38, %s4696_s16  ;;  %330 = vrot.lane.b32.xlu0 %v316_v39, %s4697_s26 }
  0xc5   : > { %v1966_v15 = vpop.permute.xlu1 %1965  ;;  %v1964_v17 = vpop.permute.xlu0 %1963 }
  0xc6   : > { %v1971_v21 = vsel %vm334_vm7, %v1964_v17, %v1966_v15  ;;  %v1979_v37 = vmul.f32 %v1964_v17, %v4924_v13  ;;  %v4494_v17 = vld [vmem:[%s5669_s1 + $0x8] sm:$0xf] }
  0xc7   : > { %v1980_v27 = vmul.f32 %v1971_v21, %v4946_v24 }
  0xc8   : > { %766 = vrot.lane.b32.xlu1 %v752_v42, %s4695_s12  ;;  %550 = vrot.lane.b32.xlu0 %v536_v43, %s4696_s16 }
  0xc9   : > { %v1970_v23 = vpop.permute.xlu1 %1969  ;;  %v1968_v26 = vpop.permute.xlu0 %1967 }
  0xca   : > { %v1973_v28 = vsel %vm334_vm7, %v1968_v26, %v1970_v23  ;;  %v1972_v34 = vsel %vm334_vm7, %v1966_v15, %v1968_v26  ;;  %v1983_v39 = vmul.f32 0.0, %v1970_v23 }
  0xcb   : > { %v1982_v30 = vmul.f32 %v1973_v28, %v4890_v50  ;;  %v1981_v38 = vmul.f32 %v1972_v34, %v4965_v35 }
  0xcc   : > { %980 = vrot.lane.b32.xlu1 %v967_v46, %s4694_s29  ;;  %764 = vrot.lane.b32.xlu0 %v751_v47, %s4695_s12 }
  0xd0   : > { %984 = vrot.lane.b32.xlu1 %v969_v52, %s4694_s29  ;;  %768 = vrot.lane.b32.xlu0 %v753_v53, %s4695_s12 }
  0xd4   : > { %1353 = vrot.lane.b32.xlu1 %v1339_v57, %s4693_s20  ;;  %982 = vrot.lane.b32.xlu0 %v968_v58, %s4694_s29 }
  0xd8   : > { %1565 = vrot.lane.b32.xlu1 %v1552_v62, %s4692_s17  ;;  %1351 = vrot.lane.b32.xlu0 %v1338_v63, %s4693_s20 }
  0xdc   : > { %1569 = vrot.lane.b32.xlu1 %v1554_v9, %s4692_s17  ;;  %1355 = vrot.lane.b32.xlu0 %v1340_v10, %s4693_s20  ;;  %v4490_v9 = vld [vmem:[%s5669_s1 + $0x4] sm:$0xf] }
  0xe0   : > { %1781 = vrot.lane.b32.xlu1 %v1767_v14, %s4691_s14  ;;  %1567 = vrot.lane.b32.xlu0 %v1553_v16, %s4692_s17 }
  0xe4   : > { %1785 = vrot.lane.b32.xlu1 %v1769_v19, %s4691_s14  ;;  %1779 = vrot.lane.b32.xlu0 %v1766_v22, %s4691_s14 }
  0xe8   : > { %1993 = vrot.lane.b32.xlu1 %v1980_v27, %s4690_s11  ;;  %1783 = vrot.lane.b32.xlu0 %v1768_v29, %s4691_s14  ;;  %v4498_v29 = vld [vmem:[%s5669_s1 + $0xc] sm:$0xf] }
  0xec   : > { %1997 = vrot.lane.b32.xlu1 %v1982_v30, %s4690_s11  ;;  %1777 = vrot.lane.b32.xlu0 %v1765_v33, %s4691_s14 }
  0xf0   : > { %1991 = vrot.lane.b32.xlu1 %v1979_v37, %s4690_s11  ;;  %1995 = vrot.lane.b32.xlu0 %v1981_v38, %s4690_s11  ;;  %v4501_v37 = vld [vmem:[%s5669_s1 + $0x10] sm:$0xf] }
  0xf4   : > { %1999 = vrot.lane.b32.xlu0 %v1983_v39, %s4690_s11 }
  0xf8   : > { %491 = vperm.xlu0 %4625, %v272_v40  }
 0x102   : > { %v325_v42 = vpop.permute.xlu0 %324 }
 0x106   : > { %v333_v41 = vpop.permute.xlu1 %332 }
 0x10a   : > { %v547_v43 = vpop.permute.xlu1 %546 }
 0x10e   : > { %v555_v44 = vpop.permute.xlu0 %554 }
 0x112   : > { %v763_v46 = vpop.permute.xlu0 %762 }
 0x116   : > { %v771_v45 = vpop.permute.xlu1 %770 }
 0x11a   : > { %v5061_v47 = vpop.permute.xlu1 %978 }
 0x11e   : > { %v987_v48 = vpop.permute.xlu0 %986 }
 0x122   : > { %v5065_v51 = vpop.permute.xlu0 %1349 }
 0x126   : > { %v5063_v49 = vpop.permute.xlu1 %1357 }
 0x12a   : > { %v5067_v52 = vpop.permute.xlu1 %1563 }
 0x12e   : > { %v329_v53 = vpop.permute.xlu1 %328  ;;  %v5069_v54 = vpop.permute.xlu0 %1571 }
 0x132   : > { %v549_v55 = vpop.permute.xlu1 %548  ;;  %v327_v56 = vpop.permute.xlu0 %326 }
 0x133   : > { %v336_v57 = vsel %vm334_vm7, %v327_v56, %v329_v53  ;;  %v335_v58 = vsel %vm334_vm7, %v325_v42, %v327_v56  ;;  %v557_v10 = vsel %vm556_vm6, %v547_v43, %v549_v55 }
 0x134   : > { %377 = vmatprep.subr.mxu0 %v336_v57 }
 0x135   : > { %378 = vmatpush1.msra.mxu0 %v335_v58 }
 0x136   : > { %v553_v60 = vpop.permute.xlu1 %552  ;;  %v331_v61 = vpop.permute.xlu0 %330  ;;  %4487 = vmatmul.mubr.msk.f32.vlgmr.msra.gmra.mxu0 %vm343_vm8, %v318_v59 }
 0x137   : > { %v338_v62 = vsel %vm334_vm7, %v331_v61, %v333_v41  ;;  %v337_v63 = vsel %vm334_vm7, %v329_v53, %v331_v61  ;;  %632 = vmatprep.mubr.f32.mxu0 %v4698_v32  ;;  %v560_v0 = vsel %vm556_vm6, %v553_v60, %v555_v44 }
 0x138   : > { %448 = vmatprep.subr.mxu1 %v338_v62 }
 0x139   : > { %449 = vmatpush1.msra.mxu1 %v337_v63  ;;  %v4517_v63 = vld [vmem:[%s5669_s1 + $0x20] sm:$0xf] }
 0x13a   : > { %v767_v1 = vpop.permute.xlu1 %766  ;;  %669 = vmatprep.subr.mxu1 %v560_v0  ;;  %v551_v2 = vpop.permute.xlu0 %550  ;;  %4488 = vmatmul.mubr.msk.f32.vlgmr.msra.gmra.mxu1 %vm343_vm8, %v318_v59 }
 0x13b   : > { %v558_v7 = vsel %vm556_vm6, %v549_v55, %v551_v2  ;;  %v559_v8 = vsel %vm556_vm6, %v551_v2, %v553_v60  ;;  %703 = vmatprep.mubr.f32.mxu1 %v4698_v32  ;;  %v4513_v55 = vld [vmem:[%s5669_s1 + $0x1c] sm:$0xf] }
 0x13c   : > { %598 = vmatprep.subr.mxu0 %v558_v7  ;;  %670 = vmatpush1.msra.mxu1 %v559_v8  ;;  %v2163_v7 = vld [vmem:[%s5672_s4] sm:$0xff] }
 0x13d   : > { %599 = vmatpush1.msra.mxu0 %v557_v10  ;;  %v2355_v8 = vld [vmem:[%s5673_s5] ss:$8 sm:$0xf]  ;;  %2166 = vperm.xlu1 %4626, %v2163_v7  }
 0x13e   : > { %v981_v12 = vpop.permute.xlu1 %980  ;;  %v765_v14 = vpop.permute.xlu0 %764  ;;  %4491 = vmatmul.mubr.msk.f32.vlgmr.msra.gmra.mxu0 %vm343_vm8, %v4490_v9  ;;  %4492 = vmatmul.mubr.msk.f32.vlgmr.msra.gmra.mxu1 %vm343_vm8, %v4490_v9  ;;  %v2360_v9 = vrot.slane %v2355_v8, %v4789_v4  ;;  %v2364_v10 = vrot.slane %v2355_v8, %v4793_v6 }
 0x13f   : > { %v773_v15 = vsel %vm772_vm5, %v763_v46, %v765_v14  ;;  %v774_v16 = vsel %vm772_vm5, %v765_v14, %v767_v1  ;;  %848 = vmatprep.mubr.f32.mxu0 %v4698_v32  ;;  %919 = vmatprep.mubr.f32.mxu1 %v4698_v32  ;;  %v989_v30 = vsel %vm988_vm4, %v5061_v47, %v981_v12 }
 0x140   : > { %814 = vmatprep.subr.mxu0 %v774_v16  ;;  %2375 = vrot.lane.b32.xlu0 %v2364_v10, %s4690_s11  ;;  %v2368_v14 = vrot.slane %v2355_v8, %v4787_v3 }
 0x141   : > { %815 = vmatpush1.msra.mxu0 %v773_v15  ;;  %2373 = vrot.lane.b32.xlu1 %v2360_v9, %s4690_s11  ;;  %v4530_v15 = vld [vmem:[%s5673_s5 + $0x1] ss:$8 sm:$0xf] }
 0x142   : > { %v985_v18 = vpop.permute.xlu1 %984  ;;  %v769_v19 = vpop.permute.xlu0 %768  ;;  %4495 = vmatmul.mubr.msk.f32.vlgmr.msra.gmra.mxu0 %vm343_vm8, %v4494_v17  ;;  %v2582_v16 = vrot.slane %v4530_v15, %v4793_v6 }
 0x143   : > { %v775_v21 = vsel %vm772_vm5, %v767_v1, %v769_v19  ;;  %v776_v22 = vsel %vm772_vm5, %v769_v19, %v771_v45  ;;  %1064 = vmatprep.mubr.f32.mxu0 %v4698_v32  ;;  %v992_v23 = vsel %vm988_vm4, %v985_v18, %v987_v48  ;;  %v4509_v45 = vld [vmem:[%s5669_s1 + $0x18] sm:$0xf]  ;;  %v2586_v19 = vrot.slane %v4530_v15, %v4787_v3 }
 0x144   : > { %885 = vmatprep.subr.mxu1 %v776_v22 }
 0x145   : > { %886 = vmatpush1.msra.mxu1 %v775_v21  ;;  %2377 = vrot.lane.b32.xlu1 %v2368_v14, %s4690_s11  ;;  %v4534_v21 = vld [vmem:[%s5673_s5 + $0x2] ss:$8 sm:$0xf] }
 0x146   : > { %v1354_v25 = vpop.permute.xlu1 %1353  ;;  %4496 = vmatmul.mubr.msk.f32.vlgmr.msra.gmra.mxu1 %vm343_vm8, %v4494_v17  ;;  %1101 = vmatprep.subr.mxu1 %v992_v23  ;;  %v983_v26 = vpop.permute.xlu0 %982  ;;  %v2578_v17 = vrot.slane %v4530_v15, %v4789_v4  ;;  %v2795_v22 = vrot.slane %v4534_v21, %v4793_v6  ;;  %v2791_v23 = vrot.slane %v4534_v21, %v4789_v4 }
 0x147   : > { %v991_v27 = vsel %vm988_vm4, %v983_v26, %v985_v18  ;;  %v990_v28 = vsel %vm988_vm4, %v981_v12, %v983_v26  ;;  %1135 = vmatprep.mubr.f32.mxu1 %v4698_v32  ;;  %v2372_v12 = vrot.slane %v2355_v8, %v4791_v5  ;;  %v2590_v18 = vrot.slane %v4530_v15, %v4791_v5 }
 0x148   : > { %1030 = vmatprep.subr.mxu0 %v990_v28  ;;  %1102 = vmatpush1.msra.mxu1 %v991_v27  ;;  %v2799_v26 = vrot.slane %v4534_v21, %v4787_v3  ;;  %v4538_v27 = vld [vmem:[%s5673_s5 + $0x3] ss:$8 sm:$0xf] }
 0x149   : > { %1031 = vmatpush1.msra.mxu0 %v989_v30  ;;  %1252 = vmatprep.subr.mxu1 %v4890_v50  ;;  %v3008_v28 = vrot.slane %v4538_v27, %v4793_v6  ;;  %v3016_v30 = vrot.slane %v4538_v27, %v4791_v5 }
 0x14a   : > { %v1566_v33 = vpop.permute.xlu1 %1565  ;;  %4499 = vmatmul.mubr.msk.f32.vlgmr.msra.gmra.mxu0 %vm343_vm8, %v4498_v29  ;;  %4500 = vmatmul.mubr.msk.f32.vlgmr.msra.gmra.mxu1 %vm343_vm8, %v4498_v29  ;;  %v1352_v34 = vpop.permute.xlu0 %1351  ;;  %v3004_v29 = vrot.slane %v4538_v27, %v4789_v4 }
 0x14b   : > { %1181 = vmatprep.subr.mxu0 %v4946_v24  ;;  %v1360_v36 = vsel %vm957_vm3, %v1352_v34, %v1354_v25  ;;  %1215 = vmatprep.mubr.f32.mxu0 %v4698_v32  ;;  %v1359_v50 = vsel %vm957_vm3, %v5065_v51, %v1352_v34  ;;  %v1573_v46 = vsel %vm741_vm2, %v5067_v52, %v1566_v33  ;;  %v4545_v34 = vld [vmem:[%s5673_s5 + $0x5] ss:$8 sm:$0xf] }
 0x14c   : > { %1182 = vmatpush1.msra.mxu0 %v4924_v13  ;;  %1253 = vmatpush1.msra.mxu1 %v4965_v35  ;;  %v4505_v35 = vld [vmem:[%s5669_s1 + $0x14] sm:$0xf] }
 0x14d   : > { %1400 = vmatprep.subr.mxu0 %v1360_v36  ;;  %1286 = vmatprep.mubr.f32.mxu1 %v4698_v32  ;;  %v3377_v36 = vrot.slane %v4545_v34, %v4793_v6 }
 0x14e   : > { %v1570_v38 = vpop.permute.xlu1 %1569  ;;  %4502 = vmatmul.mubr.msk.f32.vlgmr.msra.gmra.mxu0 %vm343_vm8, %v4501_v37  ;;  %4503 = vmatmul.mubr.msk.f32.vlgmr.msra.gmra.mxu1 %vm343_vm8, %v4501_v37  ;;  %v1356_v24 = vpop.permute.xlu0 %1355  ;;  %v3373_v37 = vrot.slane %v4545_v34, %v4789_v4 }
 0x14f   : > { %1401 = vmatpush1.msra.mxu0 %v1359_v50  ;;  %v1361_v39 = vsel %vm957_vm3, %v1354_v25, %v1356_v24  ;;  %v1362_v13 = vsel %vm957_vm3, %v1356_v24, %v5063_v49  ;;  %1434 = vmatprep.mubr.f32.mxu0 %v4698_v32  ;;  %v1576_v41 = vsel %vm741_vm2, %v1570_v38, %v5069_v54  ;;  %v4549_v24 = vld [vmem:[%s5673_s5 + $0x6] ss:$8 sm:$0xf] }
 0x150   : > { %1471 = vmatprep.subr.mxu1 %v1362_v13  ;;  %1505 = vmatprep.mubr.f32.mxu1 %v4698_v32  ;;  %v2803_v25 = vrot.slane %v4534_v21, %v4791_v5  ;;  %v3385_v50 = vrot.slane %v4545_v34, %v4791_v5  ;;  %v3586_v13 = vrot.slane %v4549_v24, %v4789_v4 }
 0x151   : > { %1472 = vmatpush1.msra.mxu1 %v1361_v39  ;;  %2379 = vrot.lane.b32.xlu0 %v2372_v12, %s4690_s11  ;;  %v3590_v39 = vrot.slane %v4549_v24, %v4793_v6 }
 0x152   : > { %v1782_v40 = vpop.permute.xlu1 %1781  ;;  %4506 = vmatmul.mubr.msk.f32.vlgmr.msra.gmra.mxu0 %vm343_vm8, %v4505_v35  ;;  %4507 = vmatmul.mubr.msk.f32.vlgmr.msra.gmra.mxu1 %vm343_vm8, %v4505_v35  ;;  %v1568_v42 = vpop.permute.xlu0 %1567  ;;  %v3598_v35 = vrot.slane %v4549_v24, %v4791_v5 }
 0x153   : > { %1685 = vmatprep.subr.mxu1 %v1576_v41  ;;  %v1575_v43 = vsel %vm741_vm2, %v1568_v42, %v1570_v38  ;;  %v1574_v44 = vsel %vm741_vm2, %v1566_v33, %v1568_v42  ;;  %1648 = vmatprep.mubr.f32.mxu0 %v4698_v32  ;;  %v3012_v33 = vrot.slane %v4538_v27, %v4787_v3  ;;  %v4553_v41 = vld [vmem:[%s5673_s5 + $0x7] ss:$8 sm:$0xf] }
 0x154   : > { %1614 = vmatprep.subr.mxu0 %v1574_v44  ;;  %1686 = vmatpush1.msra.mxu1 %v1575_v43  ;;  %v3381_v38 = vrot.slane %v4545_v34, %v4787_v3  ;;  %v3803_v42 = vrot.slane %v4553_v41, %v4793_v6  ;;  %v3799_v43 = vrot.slane %v4553_v41, %v4789_v4 }
 0x155   : > { %1615 = vmatpush1.msra.mxu0 %v1573_v46  ;;  %1719 = vmatprep.mubr.f32.mxu1 %v4698_v32  ;;  %v3811_v44 = vrot.slane %v4553_v41, %v4791_v5  ;;  %v4557_v46 = vld [vmem:[%s5673_s5 + $0x20] ss:$8 sm:$0xf] }
 0x156   : > { %v1786_v47 = vpop.permute.xlu1 %1785  ;;  %4510 = vmatmul.mubr.msk.f32.vlgmr.msra.gmra.mxu0 %vm343_vm8, %v4509_v45  ;;  %4511 = vmatmul.mubr.msk.f32.vlgmr.msra.gmra.mxu1 %vm343_vm8, %v4509_v45  ;;  %v1780_v48 = vpop.permute.xlu0 %1779  ;;  %v3807_v45 = vrot.slane %v4553_v41, %v4787_v3 }
 0x157   : > { %v1788_v49 = vsel %vm525_vm1, %v1780_v48, %v1782_v40  ;;  %1933 = vmatprep.mubr.f32.mxu1 %v4698_v32  ;;  %1862 = vmatprep.mubr.f32.mxu0 %v4698_v32 }
 0x158   : > { %1828 = vmatprep.subr.mxu0 %v1788_v49  ;;  %2593 = vrot.lane.b32.xlu0 %v2582_v16, %s4691_s14  ;;  %v4024_v49 = vrot.slane %v4557_v46, %v4791_v5 }
 0x159   : > { %2591 = vrot.lane.b32.xlu1 %v2578_v17, %s4691_s14 }
 0x15a   : > { %v1994_v51 = vpop.permute.xlu1 %1993  ;;  %v1784_v52 = vpop.permute.xlu0 %1783 }
 0x15b   : > { %v1789_v53 = vsel %vm525_vm1, %v1782_v40, %v1784_v52  ;;  %v1790_v54 = vsel %vm525_vm1, %v1784_v52, %v1786_v47  ;;  %v3594_v40 = vrot.slane %v4549_v24, %v4787_v3  ;;  %v4016_v47 = vrot.slane %v4557_v46, %v4793_v6 }
 0x15c   : > { %1899 = vmatprep.subr.mxu1 %v1790_v54  ;;  %2597 = vrot.lane.b32.xlu0 %v2590_v18, %s4691_s14 }
 0x15d   : > { %1900 = vmatpush1.msra.mxu1 %v1789_v53  ;;  %2595 = vrot.lane.b32.xlu1 %v2586_v19, %s4691_s14 }
 0x15e   : > { %v1998_v56 = vpop.permute.xlu1 %1997  ;;  %4515 = vmatmul.mubr.msk.f32.vlgmr.msra.gmra.mxu1 %vm343_vm8, %v4513_v55  ;;  %v1778_v57 = vpop.permute.xlu0 %1777 }
 0x15f   : > { %v1787_v58 = vsel %vm525_vm1, %v1778_v57, %v1780_v48  ;;  %2147 = vmatprep.mubr.f32.mxu1 %v4698_v32  ;;  %v4012_v48 = vrot.slane %v4557_v46, %v4789_v4 }
 0x160   : > { %1829 = vmatpush1.msra.mxu0 %v1787_v58  ;;  %2806 = vrot.lane.b32.xlu0 %v2795_v22, %s4692_s17 }
 0x161   : > { %4514 = vmatmul.mubr.msk.f32.vlgmr.msra.gmra.mxu0 %vm343_vm8, %v4513_v55  ;;  %2804 = vrot.lane.b32.xlu1 %v2791_v23, %s4692_s17 }
 0x162   : > { %v1992_v59 = vpop.permute.xlu1 %1991  ;;  %v1996_v60 = vpop.permute.xlu0 %1995  ;;  %2076 = vmatprep.mubr.f32.mxu0 %v4698_v32 }
 0x163   : > { %v2001_v61 = vsel %vm304_vm0, %v1992_v59, %v1994_v51  ;;  %v2002_v62 = vsel %vm304_vm0, %v1994_v51, %v1996_v60  ;;  %v2003_v2 = vsel %vm304_vm0, %v1996_v60, %v1998_v56  ;;  %v4020_v51 = vrot.slane %v4557_v46, %v4787_v3 }
 0x164   : > { %2042 = vmatprep.subr.mxu0 %v2002_v62  ;;  %2810 = vrot.lane.b32.xlu0 %v2803_v25, %s4692_s17 }
 0x165   : > { %2043 = vmatpush1.msra.mxu0 %v2001_v61  ;;  %2808 = vrot.lane.b32.xlu1 %v2799_v26, %s4692_s17 }
 0x166   : > { %4518 = vmatmul.mubr.msk.f32.vlgmr.msra.gmra.mxu0 %vm343_vm8, %v4517_v63  ;;  %v2000_v0 = vpop.permute.xlu0 %1999 }
 0x167   : > { %v2004_v1 = vsel %vm304_vm0, %v1998_v56, %v2000_v0  ;;  %2250 = vmatprep.mubr.f32.mxu0 %v4698_v32 }
 0x168   : > { %2113 = vmatprep.subr.mxu1 %v2004_v1  ;;  %3019 = vrot.lane.b32.xlu0 %v3008_v28, %s4693_s20 }
 0x169   : > { %2114 = vmatpush1.msra.mxu1 %v2003_v2  ;;  %3017 = vrot.lane.b32.xlu1 %v3004_v29, %s4693_s20 }
 0x16a   : > { %4519 = vmatmul.mubr.msk.f32.vlgmr.msra.gmra.mxu1 %vm343_vm8, %v4517_v63 }
 0x16b   : > { %2321 = vmatprep.mubr.f32.mxu1 %v4698_v32 }
 0x16c   : > { %3023 = vrot.lane.b32.xlu0 %v3016_v30, %s4693_s20 }
 0x16d   : > { %3021 = vrot.lane.b32.xlu1 %v3012_v33, %s4693_s20 }
 0x170   : > { %3388 = vrot.lane.b32.xlu0 %v3377_v36, %s4694_s29 }
 0x171   : > { %3386 = vrot.lane.b32.xlu1 %v3373_v37, %s4694_s29 }
 0x173   : > { %v492_v0 = vpop.permute.xlu0 %491 }
 0x174   : > { %3392 = vrot.lane.b32.xlu0 %v3385_v50, %s4694_s29 }
 0x175   : > { %3390 = vrot.lane.b32.xlu1 %v3381_v38, %s4694_s29 }
 0x178   : > { %3601 = vrot.lane.b32.xlu0 %v3590_v39, %s4695_s12 }
 0x179   : > { %3599 = vrot.lane.b32.xlu1 %v3586_v13, %s4695_s12 }
 0x17c   : > { %3605 = vrot.lane.b32.xlu0 %v3598_v35, %s4695_s12 }
 0x17d   : > { %3603 = vrot.lane.b32.xlu1 %v3594_v40, %s4695_s12 }
 0x180   : > { %3814 = vrot.lane.b32.xlu0 %v3803_v42, %s4696_s16 }
 0x181   : > { %3812 = vrot.lane.b32.xlu1 %v3799_v43, %s4696_s16 }
 0x184   : > { %3818 = vrot.lane.b32.xlu0 %v3811_v44, %s4696_s16 }
 0x185   : > { %3816 = vrot.lane.b32.xlu1 %v3807_v45, %s4696_s16 }
 0x188   : > { %4027 = vrot.lane.b32.xlu0 %v4016_v47, %s4697_s26 }
 0x189   : > { %4025 = vrot.lane.b32.xlu1 %v4012_v48, %s4697_s26 }
 0x18c   : > { %4031 = vrot.lane.b32.xlu0 %v4024_v49, %s4697_s26 }
 0x18d   : > { %4029 = vrot.lane.b32.xlu1 %v4020_v51, %s4697_s26 }
 0x1f6   : > { %v413_v52 = vpop.f32.mrf.mxu0 }
 0x1f7   : > { %v494_v7 = vadd.f32 %v492_v0, %v413_v52 }
 0x1f8   : > { %v415_v54 = vpop.f32.mrf.mxu0 }
 0x1f9   : > { %v495_v12 = vadd.f32 %v492_v0, %v415_v54 }
 0x1fa   : > { %v484_v53 = vpop.f32.mrf.mxu1 }
 0x1fb   : > { %v496_v8 = vadd.f32 %v492_v0, %v484_v53 }
 0x1fc   : > { %v486_v6 = vpop.f32.mrf.mxu1 }
 0x1fd   : > { %v497_v14 = vadd.f32 %v492_v0, %v486_v6 }
 0x1fe   : > { %v634_v55 = vpop.f32.mrf.mxu0  ;;  %v705_v56 = vpop.f32.mrf.mxu1 }
 0x1ff   : > { %v710_v16 = vadd.f32 %v634_v55, %v494_v7  ;;  %v712_v17 = vadd.f32 %v705_v56, %v496_v8  ;;  %v2376_v56 = vpop.permute.xlu0 %2375  ;;  %v5274_v7 = vpop.permute.xlu1 %2166 }
 0x200   : > { %v636_v57 = vpop.f32.mrf.mxu0  ;;  %v707_v4 = vpop.f32.mrf.mxu1 }
 0x201   : > { %v711_v19 = vadd.f32 %v636_v57, %v495_v12  ;;  %v713_v21 = vadd.f32 %v707_v4, %v497_v14 }
 0x202   : > { %v850_v58 = vpop.f32.mrf.mxu0 }
 0x203   : > { %v926_v23 = vadd.f32 %v850_v58, %v710_v16  ;;  %v5269_v0 = vpop.permute.xlu0 %2379 }
 0x204   : > { %v852_v60 = vpop.f32.mrf.mxu0 }
 0x205   : > { %v927_v27 = vadd.f32 %v852_v60, %v711_v19 }
 0x206   : > { %v921_v59 = vpop.f32.mrf.mxu1 }
 0x207   : > { %v928_v25 = vadd.f32 %v921_v59, %v712_v17 }
 0x208   : > { %v923_v5 = vpop.f32.mrf.mxu1 }
 0x209   : > { %v929_v28 = vadd.f32 %v923_v5, %v713_v21 }
 0x20a   : > { %v1066_v61 = vpop.f32.mrf.mxu0  ;;  %v1137_v62 = vpop.f32.mrf.mxu1 }
 0x20b   : > { %v1142_v30 = vadd.f32 %v1066_v61, %v926_v23  ;;  %v1144_v33 = vadd.f32 %v1137_v62, %v928_v25 }
 0x20c   : > { %v1068_v63 = vpop.f32.mrf.mxu0  ;;  %v1139_v3 = vpop.f32.mrf.mxu1 }
 0x20d   : > { %v1143_v36 = vadd.f32 %v1068_v63, %v927_v27  ;;  %v1145_v37 = vadd.f32 %v1139_v3, %v929_v28  ;;  %v2162_v3 = vld [vmem:[%s5671_s3] sm:$0xff] }
 0x20e   : > { %v1217_v1 = vpop.f32.mrf.mxu0  ;;  %v1288_v2 = vpop.f32.mrf.mxu1 }
 0x20f   : > { %v1293_v38 = vadd.f32 %v1217_v1, %v1142_v30  ;;  %v1295_v24 = vadd.f32 %v1288_v2, %v1144_v33 }
 0x210   : > { %v1219_v9 = vpop.f32.mrf.mxu0  ;;  %v1290_v10 = vpop.f32.mrf.mxu1 }
 0x211   : > { %v1294_v39 = vadd.f32 %v1219_v9, %v1143_v36  ;;  %v1296_v41 = vadd.f32 %v1290_v10, %v1145_v37  ;;  %v2594_v9 = vpop.permute.xlu0 %2593  ;;  %v2374_v10 = vpop.permute.xlu1 %2373 }
 0x212   : > { %v1436_v15 = vpop.f32.mrf.mxu0  ;;  %v1507_v18 = vpop.f32.mrf.mxu1  ;;  %v2389_v12 = vmul.f32 0.0, %v2374_v10  ;;  %v2381_v14 = vsel %vm304_vm0, %v2374_v10, %v2376_v56 }
 0x213   : > { %v1512_v40 = vadd.f32 %v1436_v15, %v1293_v38  ;;  %v1514_v45 = vadd.f32 %v1507_v18, %v1295_v24 }
 0x214   : > { %v1438_v22 = vpop.f32.mrf.mxu0  ;;  %v1509_v26 = vpop.f32.mrf.mxu1  ;;  %2401 = vrot.lane.b32.xlu1 %v2389_v12, %s4697_s26 }
 0x215   : > { %v1513_v42 = vadd.f32 %v1438_v22, %v1294_v39  ;;  %v1515_v51 = vadd.f32 %v1509_v26, %v1296_v41  ;;  %v5281_v15 = vpop.permute.xlu0 %2597  ;;  %v2378_v16 = vpop.permute.xlu1 %2377 }
 0x216   : > { %v1650_v29 = vpop.f32.mrf.mxu0  ;;  %v1721_v34 = vpop.f32.mrf.mxu1  ;;  %v5286_v17 = vsel %vm304_vm0, %v2376_v56, %v2378_v16 }
 0x217   : > { %v1726_v46 = vadd.f32 %v1650_v29, %v1512_v40  ;;  %v1728_v54 = vadd.f32 %v1721_v34, %v1514_v45 }
 0x218   : > { %v1652_v50 = vpop.f32.mrf.mxu0  ;;  %v1723_v13 = vpop.f32.mrf.mxu1 }
 0x219   : > { %v1727_v47 = vadd.f32 %v1652_v50, %v1513_v42  ;;  %v1729_v57 = vadd.f32 %v1723_v13, %v1515_v51  ;;  %v2807_v18 = vpop.permute.xlu0 %2806  ;;  %v2592_v19 = vpop.permute.xlu1 %2591 }
 0x21a   : > { %v2607_v21 = vmul.f32 0.0, %v2592_v19  ;;  %v2599_v22 = vsel %vm525_vm1, %v2592_v19, %v2594_v9 }
 0x21c   : > { %2619 = vrot.lane.b32.xlu0 %v2607_v21, %s4696_s16  ;;  %v4627_v21 = vld [vmem:[%s4885_s15 + $0x18] sm:$0xff] }
 0x21d   : > { %v5289_v23 = vpop.permute.xlu0 %2810  ;;  %v2596_v25 = vpop.permute.xlu1 %2595 }
 0x21e   : > { %v1935_v43 = vpop.f32.mrf.mxu1  ;;  %v5293_v26 = vsel %vm525_vm1, %v2594_v9, %v2596_v25  ;;  %v2601_v56 = vsel %vm525_vm1, %v2596_v25, %v5281_v15 }
 0x21f   : > { %v1942_v58 = vadd.f32 %v1935_v43, %v1728_v54 }
 0x220   : > { %v1937_v52 = vpop.f32.mrf.mxu1 }
 0x221   : > { %v1864_v35 = vpop.f32.mrf.mxu0  ;;  %v1943_v60 = vadd.f32 %v1937_v52, %v1729_v57  ;;  %v5295_v27 = vpop.permute.xlu0 %3019 }
 0x222   : > { %v1940_v48 = vadd.f32 %v1864_v35, %v1726_v46  ;;  %v2805_v28 = vpop.permute.xlu1 %2804 }
 0x223   : > { %v1866_v44 = vpop.f32.mrf.mxu0  ;;  %v2820_v29 = vmul.f32 0.0, %v2805_v28  ;;  %v2812_v30 = vsel %vm741_vm2, %v2805_v28, %v2807_v18 }
 0x224   : > { %v1941_v53 = vadd.f32 %v1866_v44, %v1727_v47 }
 0x225   : > { %v5298_v33 = vpop.permute.xlu0 %3023  ;;  %2832 = vrot.lane.b32.xlu1 %v2820_v29, %s4695_s12 }
 0x226   : > { %v2078_v49 = vpop.f32.mrf.mxu0  ;;  %v2809_v34 = vpop.permute.xlu1 %2808 }
 0x227   : > { %v2154_v6 = vadd.f32 %v2078_v49, %v1940_v48  ;;  %v5302_v36 = vsel %vm741_vm2, %v2807_v18, %v2809_v34 }
 0x228   : > { %v2080_v55 = vpop.f32.mrf.mxu0 }
 0x229   : > { %v2155_v4 = vadd.f32 %v2080_v55, %v1941_v53  ;;  %v2158_v61 = vmax.f32 %v2154_v6, 0.0  ;;  %v5304_v37 = vpop.permute.xlu0 %3388 }
 0x22a   : > { %v2149_v59 = vpop.f32.mrf.mxu1  ;;  %v3018_v50 = vpop.permute.xlu1 %3017 }
 0x22b   : > { %v2159_v5 = vmax.f32 %v2155_v4, 0.0  ;;  %v2156_v62 = vadd.f32 %v2149_v59, %v1942_v58  ;;  %v3033_v38 = vmul.f32 0.0, %v3018_v50  ;;  %v3025_v24 = vsel %vm957_vm3, %v3018_v50, %v5295_v27 }
 0x22c   : > { %v2151_v63 = vpop.f32.mrf.mxu1 }
 0x22d   : > { %v2157_v1 = vadd.f32 %v2151_v63, %v1943_v60  ;;  %4520 = vmatprep.subr.msk.mxu0 %vm2173_vm9, %v2159_v5  ;;  %v2160_v8 = vmax.f32 %v2156_v62, 0.0  ;;  %v5308_v39 = vpop.permute.xlu0 %3392  ;;  %3045 = vrot.lane.b32.xlu0 %v3033_v38, %s4694_s29  ;;  %v2814_v5 = vsel %vm741_vm2, %v2809_v34, %v5289_v23 }
 0x22e   : > { %4521 = vmatpush1.msk.msra.mxu0 %vm2173_vm9, %v2158_v61  ;;  %v3406_v13 = vmul.f32 0.0, %v5308_v39  ;;  %v5319_v42 = vpop.permute.xlu1 %3021 }
 0x22f   : > { %v2161_v2 = vmax.f32 %v2157_v1, 0.0  ;;  %4522 = vmatmul.mubr.msk.f32.vlgmr.msra.gmra.mxu0 %vm2169_vm10, %v2162_v3  ;;  %v3027_v61 = vsel %vm957_vm3, %v5319_v42, %v5298_v33 }
 0x230   : > { %2486 = vmatprep.mubr.f32.mxu0 %v4698_v32 }
 0x231   : > { %4523 = vmatprep.subr.msk.mxu1 %vm2173_vm9, %v2161_v2  ;;  %v5312_v35 = vpop.permute.xlu0 %3601  ;;  %3422 = vrot.lane.b32.xlu0 %v3406_v13, %s4693_s20 }
 0x232   : > { %4524 = vmatpush1.msk.msra.mxu1 %vm2173_vm9, %v2160_v8  ;;  %v5321_v43 = vpop.permute.xlu1 %3386 }
 0x233   : > { %4525 = vmatmul.mubr.msk.f32.vlgmr.msra.gmra.mxu1 %vm2169_vm10, %v2162_v3 }
 0x234   : > { %2557 = vmatprep.mubr.f32.mxu1 %v4698_v32 }
 0x235   : > { %v5315_v40 = vpop.permute.xlu0 %3605 }
 0x236   : > { %v3619_v41 = vmul.f32 0.0, %v5315_v40  ;;  %v5324_v46 = vpop.permute.xlu1 %3390 }
 0x237   : > { %v3395_v8 = vsel %vm988_vm4, %v5304_v37, %v5324_v46 }
 0x238   : > { %3635 = vrot.lane.b32.xlu1 %v3619_v41, %s4692_s17 }
 0x239   : > { %v3815_v19 = vpop.permute.xlu0 %3814 }
 0x23a   : > { %v5336_v53 = vpop.permute.xlu1 %3599 }
 0x23d   : > { %v3819_v50 = vpop.permute.xlu0 %3818 }
 0x23e   : > { %v5351_v4 = vpop.permute.xlu1 %3603 }
 0x23f   : > { %v3608_v18 = vsel %vm772_vm5, %v5312_v35, %v5351_v4 }
 0x242   : > { %v5364_v62 = vpop.permute.xlu1 %3812 }
 0x2ef   : > { %v2252_v44 = vpop.f32.mrf.mxu0 }
 0x2f0   : > { %v2253_v45 = vadd.f32 %v2252_v44, %v5274_v7 }
 0x2f1   : > { %v2254_v60 = vpop.f32.mrf.mxu0 }
 0x2f2   : > { %v5327_v47 = vadd.f32 %v2253_v45, %v4919_v11  ;;  %v2383_v11 = vsel %vm304_vm0, %v2378_v16, %v5269_v0  ;;  %v2255_v63 = vadd.f32 %v2254_v60, %v5274_v7  ;;  %v3817_v16 = vpop.permute.xlu1 %3816 }
 0x2f3   : > { %v2323_v48 = vpop.f32.mrf.mxu1  ;;  %v3821_v45 = vsel %vm556_vm6, %v3815_v19, %v3817_v16 }
 0x2f4   : > { %v5330_v49 = vmax.f32 %v5327_v47, 0.0  ;;  %v2324_v51 = vadd.f32 %v2323_v48, %v5274_v7  ;;  %v5375_v9 = vadd.f32 %v2255_v63, %v4939_v20 }
 0x2f5   : > { %v2325_v2 = vpop.f32.mrf.mxu1 }
 0x2f6   : > { %v5334_v52 = vadd.f32 %v2324_v51, %v4956_v31  ;;  %v2608_v54 = vmul.f32 %v2599_v22, %v5330_v49  ;;  %v2390_v6 = vmul.f32 %v2381_v14, %v5330_v49  ;;  %v3034_v58 = vmul.f32 %v3025_v24, %v5330_v49  ;;  %v4026_v28 = vpop.permute.xlu1 %4025 }
 0x2f7   : > { %v2821_v59 = vmul.f32 %v2812_v30, %v5330_v49  ;;  %v2326_v10 = vadd.f32 %v2325_v2, %v5274_v7  ;;  %v3402_v14 = vmul.f32 %v5321_v43, %v5330_v49  ;;  %v5387_v20 = vmax.f32 %v5375_v9, 0.0 }
 0x2f8   : > { %v5341_v55 = vmax.f32 %v5334_v52, 0.0  ;;  %2621 = vrot.lane.b32.xlu0 %v2608_v54, %s4696_s16  ;;  %2403 = vrot.lane.b32.xlu1 %v2390_v6, %s4697_s26  ;;  %v3615_v22 = vmul.f32 %v5336_v53, %v5330_v49  ;;  %v3828_v41 = vmul.f32 %v5364_v62, %v5330_v49  ;;  %v3832_v54 = vmul.f32 0.0, %v3819_v50 }
 0x2f9   : > { %v5390_v7 = vadd.f32 %v4627_v21, %v2326_v10  ;;  %v2391_v30 = vmul.f32 %v5286_v17, %v5387_v20  ;;  %v2609_v34 = vmul.f32 %v5293_v26, %v5387_v20  ;;  %v4028_v17 = vpop.permute.xlu0 %4027  ;;  %v2822_v26 = vmul.f32 %v5302_v36, %v5387_v20 }
 0x2fa   : > { %v2610_v31 = vmul.f32 %v2601_v56, %v5341_v55  ;;  %v2392_v57 = vmul.f32 %v2383_v11, %v5341_v55  ;;  %v3036_v3 = vmul.f32 %v3027_v61, %v5341_v55  ;;  %v2823_v1 = vmul.f32 %v2814_v5, %v5341_v55  ;;  %v4030_v13 = vpop.permute.xlu1 %4029  ;;  %v4526_v5 = vld [vmem:[%s5670_s2 + $0x4] sm:$0xf]  ;;  %v4562_v61 = vld [vmem:[%s5672_s4 + $0x8] sm:$0xff] }
 0x2fb   : > { %v3404_v12 = vmul.f32 %v3395_v8, %v5341_v55  ;;  %v3617_v25 = vmul.f32 %v3608_v18, %v5341_v55  ;;  %v5398_v29 = vmax.f32 %v5390_v7, 0.0  ;;  %v4034_v44 = vsel %vm334_vm7, %v4028_v17, %v4030_v13 }
 0x2fc   : > { %2625 = vrot.lane.b32.xlu0 %v2610_v31, %s4696_s16  ;;  %2407 = vrot.lane.b32.xlu1 %v2392_v57, %s4697_s26  ;;  %v3026_v36 = vsel %vm957_vm3, %v5295_v27, %v5319_v42  ;;  %v3830_v48 = vmul.f32 %v3821_v45, %v5341_v55  ;;  %v3394_v27 = vsel %vm988_vm4, %v5321_v43, %v5304_v37  ;;  %v4531_v45 = vld [vmem:[%s5669_s1 + $0x28] sm:$0xf] }
 0x2fd   : > { %v2393_v38 = vmul.f32 %v5269_v0, %v5398_v29  ;;  %v2611_v24 = vmul.f32 %v5281_v15, %v5398_v29  ;;  %v4043_v0 = vmul.f32 %v4034_v44, %v5341_v55  ;;  %v2824_v15 = vmul.f32 %v5289_v23, %v5398_v29  ;;  %v4032_v31 = vpop.permute.xlu0 %4031 }
 0x2fe   : > { %v3035_v51 = vmul.f32 %v3026_v36, %v5387_v20  ;;  %v3037_v23 = vmul.f32 %v5298_v33, %v5398_v29  ;;  %v3607_v42 = vsel %vm772_vm5, %v5336_v53, %v5312_v35  ;;  %v3403_v11 = vmul.f32 %v3394_v27, %v5387_v20 }
 0x2ff   : > { %v3616_v6 = vmul.f32 %v3607_v42, %v5387_v20  ;;  %v3396_v33 = vsel %vm988_vm4, %v5324_v46, %v5308_v39  ;;  %v3609_v37 = vsel %vm772_vm5, %v5351_v4, %v5315_v40  ;;  %v3820_v53 = vsel %vm556_vm6, %v5364_v62, %v3815_v19  ;;  %v2402_v62 = vpop.permute.xlu1 %2401  ;;  %v4535_v42 = vld [vmem:[%s5669_s1 + $0x2c] sm:$0xf] }
 0x300   : > { %3047 = vrot.lane.b32.xlu0 %v3034_v58, %s4694_s29  ;;  %2834 = vrot.lane.b32.xlu1 %v2821_v59, %s4695_s12  ;;  %v3618_v43 = vmul.f32 %v3609_v37, %v5398_v29  ;;  %v3405_v35 = vmul.f32 %v3396_v33, %v5398_v29  ;;  %v4033_v56 = vsel %vm334_vm7, %v4026_v28, %v4028_v17  ;;  %v4045_v60 = vmul.f32 0.0, %v4032_v31 }
 0x301   : > { %v4042_v39 = vmul.f32 %v4033_v56, %v5387_v20  ;;  %v3829_v46 = vmul.f32 %v3820_v53, %v5387_v20  ;;  %v3822_v40 = vsel %vm556_vm6, %v3817_v16, %v3819_v50  ;;  %v4035_v57 = vsel %vm334_vm7, %v4030_v13, %v4032_v31  ;;  %v2620_v63 = vpop.permute.xlu0 %2619  ;;  %v4527_v13 = vld [vmem:[%s5669_s1 + $0x24] sm:$0xf]  ;;  %v4539_v31 = vld [vmem:[%s5669_s1 + $0x30] sm:$0xf] }
 0x302   : > { %v4044_v4 = vmul.f32 %v4035_v57, %v5398_v29  ;;  %v3831_v58 = vmul.f32 %v3822_v40, %v5398_v29  ;;  %v4041_v59 = vmul.f32 %v4026_v28, %v5330_v49 }
 0x304   : > { %3051 = vrot.lane.b32.xlu0 %v3036_v3, %s4694_s29  ;;  %2838 = vrot.lane.b32.xlu1 %v2823_v1, %s4695_s12  ;;  %v2833_v1 = vpop.permute.xlu1 %2832 }
 0x305   : > { %v5478_v3 = vpop.permute.xlu0 %3045 }
 0x308   : > { %3418 = vrot.lane.b32.xlu0 %v3404_v12, %s4693_s20  ;;  %3414 = vrot.lane.b32.xlu1 %v3402_v14, %s4693_s20  ;;  %v5480_v2 = vpop.permute.xlu1 %3635 }
 0x309   : > { %v5482_v8 = vpop.permute.xlu0 %3422 }
 0x30c   : > { %3627 = vrot.lane.b32.xlu0 %v3615_v22, %s4692_s17  ;;  %3631 = vrot.lane.b32.xlu1 %v3617_v25, %s4692_s17 }
 0x310   : > { %2405 = vrot.lane.b32.xlu0 %v2391_v30, %s4697_s26  ;;  %2623 = vrot.lane.b32.xlu1 %v2609_v34, %s4696_s16 }
 0x314   : > { %2409 = vrot.lane.b32.xlu0 %v2393_v38, %s4697_s26  ;;  %2627 = vrot.lane.b32.xlu1 %v2611_v24, %s4696_s16 }
 0x318   : > { %2836 = vrot.lane.b32.xlu0 %v2822_v26, %s4695_s12  ;;  %3840 = vrot.lane.b32.xlu1 %v3828_v41, %s4691_s14 }
 0x31c   : > { %2840 = vrot.lane.b32.xlu0 %v2824_v15, %s4695_s12  ;;  %4057 = vrot.lane.b32.xlu1 %v4043_v0, %s4690_s11  ;;  %s4700_s12 = smov [#allocation4]  }
 0x320   : > { %3844 = vrot.lane.b32.xlu0 %v3830_v48, %s4691_s14  ;;  %3049 = vrot.lane.b32.xlu1 %v3035_v51, %s4694_s29 }
 0x324   : > { %3848 = vrot.lane.b32.xlu0 %v3832_v54, %s4691_s14  ;;  %3053 = vrot.lane.b32.xlu1 %v3037_v23, %s4694_s29  ;;  %s4628_s29 = scalar_lea.vmem %s4422_s28, 512 }
 0x325   : > { %p4629_p11 = scmp.ne.s32.totalorder %s4422_s28, %s4628_s29 }
 0x327   : > { %p4630_p12 = pnand %p4629_p11, %p4774_p5 }
 0x328   : > { %3629 = vrot.lane.b32.xlu0 %v3616_v6, %s4692_s17  ;;  %3416 = vrot.lane.b32.xlu1 %v3403_v11, %s4693_s20 }
 0x329   : > { %p4631_p13 = pneg %p4630_p12 }
 0x32c   : > { %3633 = vrot.lane.b32.xlu0 %v3618_v43, %s4692_s17  ;;  %3420 = vrot.lane.b32.xlu1 %v3405_v35, %s4693_s20  ;;  %s5633_s20 = scalar_lea.hbm %s5674_s6, %s4575_s18 }
 0x330   : > { %3842 = vrot.lane.b32.xlu1 %v3829_v46, %s4691_s14  ;;  %4055 = vrot.lane.b32.xlu0 %v4042_v39, %s4690_s11 }
 0x334   : > { %3846 = vrot.lane.b32.xlu1 %v3831_v58, %s4691_s14  ;;  %4059 = vrot.lane.b32.xlu0 %v4044_v4, %s4690_s11  ;;  %v4542_v4 = vld [vmem:[%s5669_s1 + $0x34] sm:$0xf] }
 0x338   : > { %4061 = vrot.lane.b32.xlu1 %v4045_v60, %s4690_s11  ;;  %4053 = vrot.lane.b32.xlu0 %v4041_v59, %s4690_s11  ;;  %s4632_s11 = sshll.u32 %s4700_s12, 4  ;;  %s4633_s11 = int_to_ptr.vmem [resolvable:$false] %s4632_s11 }
 0x339   : > { %s4634_s14 = scalar_lea.vmem %s4633_s11, 1024  ;;  %p4635_p0 = scmp.lt.s32.totalorder %s4422_s28, %s4633_s11 }
 0x33a   : > { %p4636_p1 = scmp.lt.s32.totalorder %s4634_s14, %s4628_s29 }
 0x33c   : > { %2566 = vperm.xlu1 %4626, %v4526_v5   ;;  %4230 = vperm.xlu0 %4625, %v4562_v61   ;;  %v4546_v5 = vld [vmem:[%s5669_s1 + $0x38] sm:$0xf]  ;;  %p4637_p2 = por %p4636_p1, %p4635_p0 }
 0x33e   : > { %p4638_p3 = pnand %p4637_p2, %p4631_p13 }
 0x36a   : > { %v2404_v10 = vpop.permute.xlu1 %2403  ;;  %v2622_v12 = vpop.permute.xlu0 %2621 }
 0x36b   : > { %v2411_v17 = vsel %vm334_vm7, %v2402_v62, %v2404_v10  ;;  %v2629_v41 = vsel %vm556_vm6, %v2620_v63, %v2622_v12 }
 0x36e   : > { %v2408_v14 = vpop.permute.xlu1 %2407  ;;  %v2626_v16 = vpop.permute.xlu0 %2625 }
 0x372   : > { %v2835_v18 = vpop.permute.xlu1 %2834  ;;  %v3048_v19 = vpop.permute.xlu0 %3047 }
 0x373   : > { %v2842_v6 = vsel %vm772_vm5, %v2833_v1, %v2835_v18  ;;  %v3055_v39 = vsel %vm988_vm4, %v5478_v3, %v3048_v19  ;;  %v4550_v1 = vld [vmem:[%s5669_s1 + $0x3c] sm:$0xf] }
 0x376   : > { %v2839_v21 = vpop.permute.xlu1 %2838  ;;  %v5484_v22 = vpop.permute.xlu0 %3051 }
 0x37a   : > { %v5486_v25 = vpop.permute.xlu1 %3414  ;;  %v5488_v28 = vpop.permute.xlu0 %3418 }
 0x37e   : > { %v5490_v30 = vpop.permute.xlu1 %3631  ;;  %v5492_v34 = vpop.permute.xlu0 %3627 }
 0x382   : > { %v2624_v50 = vpop.permute.xlu1 %2623  ;;  %v2406_v38 = vpop.permute.xlu0 %2405 }
 0x383   : > { %v2412_v24 = vsel %vm334_vm7, %v2404_v10, %v2406_v38  ;;  %v2630_v26 = vsel %vm556_vm6, %v2622_v12, %v2624_v50  ;;  %v2413_v36 = vsel %vm334_vm7, %v2406_v38, %v2408_v14  ;;  %v2631_v23 = vsel %vm556_vm6, %v2624_v50, %v2626_v16  ;;  %v4558_v50 = vld [vmem:[%s5669_s1 + $0x44] sm:$0xf] }
 0x384   : > { %2452 = vmatprep.subr.mxu0 %v2412_v24 }
 0x385   : > { %2453 = vmatpush1.msra.mxu0 %v2411_v17 }
 0x386   : > { %v2628_v44 = vpop.permute.xlu1 %2627  ;;  %4528 = vmatmul.mubr.msk.f32.vlgmr.msra.gmra.mxu0 %vm343_vm8, %v4527_v13  ;;  %2670 = vmatprep.subr.mxu0 %v2630_v26  ;;  %v2410_v0 = vpop.permute.xlu0 %2409 }
 0x387   : > { %2671 = vmatpush1.msra.mxu0 %v2629_v41  ;;  %v2414_v15 = vsel %vm334_vm7, %v2408_v14, %v2410_v0  ;;  %2704 = vmatprep.mubr.f32.mxu0 %v4698_v32  ;;  %v2632_v51 = vsel %vm556_vm6, %v2626_v16, %v2628_v44 }
 0x388   : > { %2523 = vmatprep.subr.mxu1 %v2414_v15 }
 0x389   : > { %2524 = vmatpush1.msra.mxu1 %v2413_v36 }
 0x38a   : > { %v5508_v48 = vpop.permute.xlu1 %3840  ;;  %4529 = vmatmul.mubr.msk.f32.vlgmr.msra.gmra.mxu1 %vm343_vm8, %v4527_v13  ;;  %4532 = vmatmul.mubr.msk.f32.vlgmr.msra.gmra.mxu0 %vm343_vm8, %v4531_v45  ;;  %v2837_v54 = vpop.permute.xlu0 %2836 }
 0x38b   : > { %2741 = vmatprep.subr.mxu1 %v2632_v51  ;;  %v2843_v27 = vsel %vm772_vm5, %v2835_v18, %v2837_v54  ;;  %2775 = vmatprep.mubr.f32.mxu1 %v4698_v32  ;;  %v2844_v43 = vsel %vm772_vm5, %v2837_v54, %v2839_v21 }
 0x38c   : > { %2742 = vmatpush1.msra.mxu1 %v2631_v23  ;;  %2883 = vmatprep.subr.mxu0 %v2843_v27 }
 0x38d   : > { %2884 = vmatpush1.msra.mxu0 %v2842_v6  ;;  %2917 = vmatprep.mubr.f32.mxu0 %v4698_v32 }
 0x38e   : > { %v5521_v11 = vpop.permute.xlu1 %4057  ;;  %4533 = vmatmul.mubr.msk.f32.vlgmr.msra.gmra.mxu1 %vm343_vm8, %v4531_v45  ;;  %4536 = vmatmul.mubr.msk.f32.vlgmr.msra.gmra.mxu0 %vm343_vm8, %v4535_v42  ;;  %v2841_v33 = vpop.permute.xlu0 %2840 }
 0x38f   : > { %v2845_v37 = vsel %vm772_vm5, %v2839_v21, %v2841_v33  ;;  %2988 = vmatprep.mubr.f32.mxu1 %v4698_v32  ;;  %3130 = vmatprep.mubr.f32.mxu0 %v4698_v32 }
 0x390   : > { %2954 = vmatprep.subr.mxu1 %v2845_v37 }
 0x391   : > { %2955 = vmatpush1.msra.mxu1 %v2844_v43 }
 0x392   : > { %v3050_v35 = vpop.permute.xlu1 %3049  ;;  %4537 = vmatmul.mubr.msk.f32.vlgmr.msra.gmra.mxu1 %vm343_vm8, %v4535_v42  ;;  %v5530_v53 = vpop.permute.xlu0 %3844 }
 0x393   : > { %v3056_v56 = vsel %vm988_vm4, %v3048_v19, %v3050_v35  ;;  %3201 = vmatprep.mubr.f32.mxu1 %v4698_v32  ;;  %v3057_v58 = vsel %vm988_vm4, %v3050_v35, %v5484_v22  ;;  %v4554_v19 = vld [vmem:[%s5669_s1 + $0x40] sm:$0xf] }
 0x394   : > { %3096 = vmatprep.subr.mxu0 %v3056_v56 }
 0x395   : > { %3097 = vmatpush1.msra.mxu0 %v3055_v39 }
 0x396   : > { %v3054_v46 = vpop.permute.xlu1 %3053  ;;  %4540 = vmatmul.mubr.msk.f32.vlgmr.msra.gmra.mxu0 %vm343_vm8, %v4539_v31  ;;  %3247 = vmatprep.subr.mxu0 %v5387_v20  ;;  %v3849_v40 = vpop.permute.xlu0 %3848 }
 0x397   : > { %3248 = vmatpush1.msra.mxu0 %v5330_v49  ;;  %v3058_v57 = vsel %vm988_vm4, %v5484_v22, %v3054_v46  ;;  %3281 = vmatprep.mubr.f32.mxu0 %v4698_v32 }
 0x398   : > { %3167 = vmatprep.subr.mxu1 %v3058_v57 }
 0x399   : > { %3168 = vmatpush1.msra.mxu1 %v3057_v58 }
 0x39a   : > { %v3417_v59 = vpop.permute.xlu1 %3416  ;;  %4541 = vmatmul.mubr.msk.f32.vlgmr.msra.gmra.mxu1 %vm343_vm8, %v4539_v31  ;;  %4543 = vmatmul.mubr.msk.f32.vlgmr.msra.gmra.mxu0 %vm343_vm8, %v4542_v4  ;;  %v3630_v49 = vpop.permute.xlu0 %3629 }
 0x39b   : > { %v3424_v20 = vsel %vm957_vm3, %v5486_v25, %v3417_v59  ;;  %3318 = vmatprep.subr.mxu1 %v5398_v29  ;;  %v3425_v60 = vsel %vm957_vm3, %v3417_v59, %v5488_v28  ;;  %3352 = vmatprep.mubr.f32.mxu1 %v4698_v32  ;;  %v3638_v29 = vsel %vm741_vm2, %v3630_v49, %v5490_v30 }
 0x39c   : > { %3319 = vmatpush1.msra.mxu1 %v5341_v55  ;;  %3465 = vmatprep.subr.mxu0 %v3425_v60  ;;  %v3637_v63 = vsel %vm741_vm2, %v5492_v34, %v3630_v49 }
 0x39d   : > { %3466 = vmatpush1.msra.mxu0 %v3424_v20  ;;  %3499 = vmatprep.mubr.f32.mxu0 %v4698_v32 }
 0x39e   : > { %v3421_v61 = vpop.permute.xlu1 %3420  ;;  %4544 = vmatmul.mubr.msk.f32.vlgmr.msra.gmra.mxu1 %vm343_vm8, %v4542_v4  ;;  %4547 = vmatmul.mubr.msk.f32.vlgmr.msra.gmra.mxu0 %vm343_vm8, %v4546_v5  ;;  %v3634_v62 = vpop.permute.xlu0 %3633 }
 0x39f   : > { %v3426_v3 = vsel %vm957_vm3, %v5488_v28, %v3421_v61  ;;  %3678 = vmatprep.subr.mxu0 %v3638_v29  ;;  %v3427_v55 = vsel %vm957_vm3, %v3421_v61, %v5482_v8  ;;  %3570 = vmatprep.mubr.f32.mxu1 %v4698_v32  ;;  %v3640_v12 = vsel %vm741_vm2, %v3634_v62, %v5480_v2 }
 0x3a0   : > { %3679 = vmatpush1.msra.mxu0 %v3637_v63  ;;  %3536 = vmatprep.subr.mxu1 %v3427_v55  ;;  %v3639_v14 = vsel %vm741_vm2, %v5490_v30, %v3634_v62 }
 0x3a1   : > { %3537 = vmatpush1.msra.mxu1 %v3426_v3  ;;  %3712 = vmatprep.mubr.f32.mxu0 %v4698_v32 }
 0x3a2   : > { %v3843_v10 = vpop.permute.xlu1 %3842  ;;  %4548 = vmatmul.mubr.msk.f32.vlgmr.msra.gmra.mxu1 %vm343_vm8, %v4546_v5  ;;  %4551 = vmatmul.mubr.msk.f32.vlgmr.msra.gmra.mxu0 %vm343_vm8, %v4550_v1  ;;  %v4056_v8 = vpop.permute.xlu0 %4055 }
 0x3a3   : > { %v3850_v16 = vsel %vm525_vm1, %v5508_v48, %v3843_v10  ;;  %3749 = vmatprep.subr.mxu1 %v3640_v12  ;;  %v3851_v18 = vsel %vm525_vm1, %v3843_v10, %v5530_v53  ;;  %3783 = vmatprep.mubr.f32.mxu1 %v4698_v32  ;;  %v4064_v21 = vsel %vm304_vm0, %v4056_v8, %v5521_v11 }
 0x3a4   : > { %3750 = vmatpush1.msra.mxu1 %v3639_v14  ;;  %3891 = vmatprep.subr.mxu0 %v3851_v18 }
 0x3a5   : > { %3892 = vmatpush1.msra.mxu0 %v3850_v16  ;;  %3925 = vmatprep.mubr.f32.mxu0 %v4698_v32 }
 0x3a6   : > { %v3847_v2 = vpop.permute.xlu1 %3846  ;;  %4552 = vmatmul.mubr.msk.f32.vlgmr.msra.gmra.mxu1 %vm343_vm8, %v4550_v1  ;;  %4555 = vmatmul.mubr.msk.f32.vlgmr.msra.gmra.mxu0 %vm343_vm8, %v4554_v19  ;;  %v4060_v22 = vpop.permute.xlu0 %4059 }
 0x3a7   : > { %v3852_v25 = vsel %vm525_vm1, %v5530_v53, %v3847_v2  ;;  %4104 = vmatprep.subr.mxu0 %v4064_v21  ;;  %v3853_v28 = vsel %vm525_vm1, %v3847_v2, %v3849_v40  ;;  %3996 = vmatprep.mubr.f32.mxu1 %v4698_v32  ;;  %v4065_v13 = vsel %vm304_vm0, %v5521_v11, %v4060_v22 }
 0x3a8   : > { %3962 = vmatprep.subr.mxu1 %v3853_v28  ;;  %4138 = vmatprep.mubr.f32.mxu0 %v4698_v32 }
 0x3a9   : > { %3963 = vmatpush1.msra.mxu1 %v3852_v25 }
 0x3aa   : > { %v4062_v30 = vpop.permute.xlu1 %4061  ;;  %4556 = vmatmul.mubr.msk.f32.vlgmr.msra.gmra.mxu1 %vm343_vm8, %v4554_v19  ;;  %v4054_v34 = vpop.permute.xlu0 %4053 }
 0x3ab   : > { %v4063_v38 = vsel %vm304_vm0, %v4054_v34, %v4056_v8  ;;  %v4066_v24 = vsel %vm304_vm0, %v4060_v22, %v4062_v30  ;;  %4209 = vmatprep.mubr.f32.mxu1 %v4698_v32 }
 0x3ac   : > { %4105 = vmatpush1.msra.mxu0 %v4063_v38  ;;  %4175 = vmatprep.subr.mxu1 %v4066_v24 }
 0x3ad   : > { %4559 = vmatmul.mubr.msk.f32.vlgmr.msra.gmra.mxu0 %vm343_vm8, %v4558_v50  ;;  %4176 = vmatpush1.msra.mxu1 %v4065_v13 }
 0x3ae   : > { %4560 = vmatmul.mubr.msk.f32.vlgmr.msra.gmra.mxu1 %vm343_vm8, %v4558_v50  ;;  %4312 = vmatprep.mubr.f32.mxu0 %v4698_v32 }
 0x3af   : > { %4383 = vmatprep.mubr.f32.mxu1 %v4698_v32 }
 0x3b7   : > { %v2567_v43 = vpop.permute.xlu1 %2566 }
 0x446   : > { %v2488_v17 = vpop.f32.mrf.mxu0 }
 0x447   : > { %v2569_v53 = vadd.f32 %v2567_v43, %v2488_v17 }
 0x448   : > { %v2490_v26 = vpop.f32.mrf.mxu0 }
 0x449   : > { %v2570_v56 = vadd.f32 %v2567_v43, %v2490_v26 }
 0x44a   : > { %v2559_v41 = vpop.f32.mrf.mxu1  ;;  %v2706_v44 = vpop.f32.mrf.mxu0 }
 0x44b   : > { %v2571_v31 = vadd.f32 %v2567_v43, %v2559_v41  ;;  %v2782_v40 = vadd.f32 %v2706_v44, %v2569_v53 }
 0x44c   : > { %v2561_v0 = vpop.f32.mrf.mxu1  ;;  %v2708_v15 = vpop.f32.mrf.mxu0 }
 0x44d   : > { %v2572_v57 = vadd.f32 %v2567_v43, %v2561_v0  ;;  %v2783_v4 = vadd.f32 %v2708_v15, %v2570_v56  ;;  %v4231_v43 = vpop.permute.xlu0 %4230 }
 0x44e   : > { %v2777_v45 = vpop.f32.mrf.mxu1  ;;  %v2919_v36 = vpop.f32.mrf.mxu0 }
 0x44f   : > { %v2784_v58 = vadd.f32 %v2777_v45, %v2571_v31  ;;  %v2995_v20 = vadd.f32 %v2919_v36, %v2782_v40 }
 0x450   : > { %v2779_v48 = vpop.f32.mrf.mxu1  ;;  %v2921_v51 = vpop.f32.mrf.mxu0 }
 0x451   : > { %v2785_v60 = vadd.f32 %v2779_v48, %v2572_v57  ;;  %v2996_v5 = vadd.f32 %v2921_v51, %v2783_v4 }
 0x452   : > { %v2990_v54 = vpop.f32.mrf.mxu1 }
 0x453   : > { %v2997_v61 = vadd.f32 %v2990_v54, %v2784_v58 }
 0x454   : > { %v2992_v27 = vpop.f32.mrf.mxu1 }
 0x455   : > { %v2998_v63 = vadd.f32 %v2992_v27, %v2785_v60 }
 0x456   : > { %v3132_v23 = vpop.f32.mrf.mxu0 }
 0x457   : > { %v3208_v3 = vadd.f32 %v3132_v23, %v2995_v20 }
 0x458   : > { %v3134_v42 = vpop.f32.mrf.mxu0 }
 0x459   : > { %v3209_v55 = vadd.f32 %v3134_v42, %v2996_v5 }
 0x45a   : > { %v3203_v6 = vpop.f32.mrf.mxu1  ;;  %v3283_v11 = vpop.f32.mrf.mxu0 }
 0x45b   : > { %v3210_v1 = vadd.f32 %v3203_v6, %v2997_v61  ;;  %v3359_v12 = vadd.f32 %v3283_v11, %v3208_v3 }
 0x45c   : > { %v3205_v33 = vpop.f32.mrf.mxu1  ;;  %v3285_v37 = vpop.f32.mrf.mxu0 }
 0x45d   : > { %v3211_v8 = vadd.f32 %v3205_v33, %v2998_v63  ;;  %v3360_v16 = vadd.f32 %v3285_v37, %v3209_v55  ;;  %v4561_v33 = vld [vmem:[%s5671_s3 + $0x8] sm:$0xff] }
 0x45e   : > { %v3354_v32 = vpop.f32.mrf.mxu1  ;;  %v3501_v35 = vpop.f32.mrf.mxu0 }
 0x45f   : > { %v3361_v18 = vadd.f32 %v3354_v32, %v3210_v1  ;;  %v3577_v2 = vadd.f32 %v3501_v35, %v3359_v12 }
 0x460   : > { %v3356_v39 = vpop.f32.mrf.mxu1  ;;  %v3503_v46 = vpop.f32.mrf.mxu0 }
 0x461   : > { %v3362_v21 = vadd.f32 %v3356_v39, %v3211_v8  ;;  %v3578_v22 = vadd.f32 %v3503_v46, %v3360_v16 }
 0x462   : > { %v3572_v59 = vpop.f32.mrf.mxu1  ;;  %v3714_v49 = vpop.f32.mrf.mxu0 }
 0x463   : > { %v3579_v25 = vadd.f32 %v3572_v59, %v3361_v18  ;;  %v3790_v30 = vadd.f32 %v3714_v49, %v3577_v2 }
 0x464   : > { %v3574_v29 = vpop.f32.mrf.mxu1  ;;  %v3716_v62 = vpop.f32.mrf.mxu0 }
 0x465   : > { %v3580_v34 = vadd.f32 %v3574_v29, %v3362_v21  ;;  %v3791_v38 = vadd.f32 %v3716_v62, %v3578_v22 }
 0x466   : > { %v3785_v10 = vpop.f32.mrf.mxu1  ;;  %v3927_v14 = vpop.f32.mrf.mxu0 }
 0x467   : > { %v3792_v24 = vadd.f32 %v3785_v10, %v3579_v25  ;;  %v4003_v17 = vadd.f32 %v3927_v14, %v3790_v30 }
 0x468   : > { %v3787_v19 = vpop.f32.mrf.mxu1  ;;  %v3929_v50 = vpop.f32.mrf.mxu0 }
 0x469   : > { %v3793_v26 = vadd.f32 %v3787_v19, %v3580_v34  ;;  %v4004_v44 = vadd.f32 %v3929_v50, %v3791_v38 }
 0x46a   : > { %v3998_v28 = vpop.f32.mrf.mxu1 }
 0x46b   : > { %v4005_v0 = vadd.f32 %v3998_v28, %v3792_v24 }
 0x46c   : > { %v4000_v13 = vpop.f32.mrf.mxu1 }
 0x46d   : > { %v4140_v41 = vpop.f32.mrf.mxu0  ;;  %v4006_v45 = vadd.f32 %v4000_v13, %v3793_v26 }
 0x46e   : > { %v4211_v15 = vpop.f32.mrf.mxu1  ;;  %v4216_v36 = vadd.f32 %v4140_v41, %v4003_v17 }
 0x46f   : > { %v4142_v48 = vpop.f32.mrf.mxu0  ;;  %v4218_v51 = vadd.f32 %v4211_v15, %v4005_v0 }
 0x470   : > { %v4217_v54 = vadd.f32 %v4142_v48, %v4004_v44  ;;  %v4213_v23 = vpop.f32.mrf.mxu1  ;;  %v4220_v6 = vmax.f32 %v4216_v36, 0.0 }
 0x471   : > { %v4219_v27 = vadd.f32 %v4213_v23, %v4006_v45  ;;  %v4222_v37 = vmax.f32 %v4218_v51, 0.0 }
 0x472   : > { %v4221_v42 = vmax.f32 %v4217_v54, 0.0 }
 0x473   : > { %v4223_v11 = vmax.f32 %v4219_v27, 0.0 }
 0x474   : > { %4563 = vmatprep.subr.msk.mxu0 %vm2173_vm9, %v4221_v42 }
 0x475   : > { %4564 = vmatpush1.msk.msra.mxu0 %vm2173_vm9, %v4220_v6  ;;  %4566 = vmatprep.subr.msk.mxu1 %vm2173_vm9, %v4223_v11 }
 0x476   : > { %4565 = vmatmul.mubr.msk.f32.vlgmr.msra.gmra.mxu0 %vm2169_vm10, %v4561_v33  ;;  %4567 = vmatpush1.msk.msra.mxu1 %vm2173_vm9, %v4222_v37 }
 0x477   : > { %4568 = vmatmul.mubr.msk.f32.vlgmr.msra.gmra.mxu1 %vm2169_vm10, %v4561_v33 }
 0x536   : > { %v4314_v32 = vpop.f32.mrf.mxu0 }
 0x537   : > { %v4315_v35 = vadd.f32 %v4314_v32, %v4231_v43  ;;  %v4385_v53 = vpop.f32.mrf.mxu1 }
 0x538   : > { %v4386_v56 = vadd.f32 %v4385_v53, %v4231_v43  ;;  %v4316_v31 = vpop.f32.mrf.mxu0 }
 0x539   : > { %v4390_v39 = vadd.f32 %v4315_v35, %v5327_v47  ;;  %v4317_v46 = vadd.f32 %v4316_v31, %v4231_v43  ;;  %v4387_v40 = vpop.f32.mrf.mxu1 }
 0x53a   : > { %v4392_v57 = vadd.f32 %v4386_v56, %v5334_v52  ;;  %v4388_v4 = vadd.f32 %v4387_v40, %v4231_v43 }
 0x53b   : > { %4402 = vst [vmem:[%s244_s19] sm:$0xff] %v4390_v39  ;;  %v4391_v58 = vadd.f32 %v4317_v46, %v5375_v9 }
 0x53c   : > { %4404 = vst [vmem:[%s244_s19 + $0x10] sm:$0xff] %v4392_v57  ;;  %v4393_v59 = vadd.f32 %v4388_v4, %v5390_v7 }
 0x53d   : > { %4403 = vst [vmem:[%s244_s19 + $0x8] sm:$0xff] %v4391_v58 }
 0x53e   : > { %4405 = vst [vmem:[%s244_s19 + $0x18] sm:$0xff] %v4393_v59 }
 0x53f   : > { %4641 = shalt.err (!%p4638_p3)
}
 0x540   : > { %s4642_s16 = scalar_lea.hbm %s5633_s20, 512  ;;  %s4646_s10 = scalar_lea.hbm %s5674_s6, 1024 }
 0x541   : > { %p4643_p4 = scmp.ne.s32.totalorder %s5633_s20, %s4642_s16  ;;  %p4647_p9 = scmp.lt.s32.totalorder %s5633_s20, %s5674_s6 }
 0x542   : > { %p4648_p10 = scmp.lt.s32.totalorder %s4646_s10, %s4642_s16 }
 0x543   : > { %p4644_p7 = pnand %p4643_p4, %p4774_p5 }
 0x544   : > { %p4649_p11 = por %p4648_p10, %p4647_p9 }
 0x545   : > { %p4645_p8 = pneg %p4644_p7 }
 0x547   : > { %p4650_p12 = pnand %p4649_p11, %p4645_p8 }
 0x549   : > { %4653 = shalt.err (!%p4650_p12)
}
 0x54a   : > { %4576 = dma.vmem_to_hbm [thread:$0]  (%p4774_p5), %s4422_s28, 512, %s5633_s20, %s4407_s25  }
 0x54b PF: > { %p4582_p13 = scmp.ge.s32.totalorder %s4688_s24, 2  ;;  %s4433_s19 = sand.u32 1, %s4676_s21  }
 0x54c   : > { %s4434_s9 = scalar_lea.sflag [#allocation5], %s4433_s19 }
 0x54d   : > { %p4579_p0 = pnand %p4582_p13, %p4778_p6 }
 0x54f   : > { %p4580_p1 = pneg %p4579_p0 }
 0x551   : > { %4671 = dma.done.wait (%p4580_p1), %s4434_s9, 512  }
 0x552   : > { %4673 = vsyncadd (%p4580_p1), %s4434_s9, 4294966784  ;;  %p16_p2 = scmp.ge.s32.totalorder %s4761_s27, 4   ;;  %s5677_s21 = smov %s4680_s22 }
 0x553   : > { %s5678_s22 = smov %s4684_s23  ;;  %s5679_s23 = smov %s4772_s30 }
 0x554   : > { %s5680_s24 = smov %s4761_s27  ;;  %18 = sbr.rel (!%p16_p2) target bundleno = 3 (0x3), region = 106 }
 0x559   :  { %4439 = vsyncpa [#allocation5], 1 }
 0x55a   :  { %4441 = vsyncpa [#allocation5 + $0x1], 1 }

</bundles_post_ra>
